<compile_context>
chip_gen: v7x
topology: tpu7x:2x2x1
jax: 0.10.0
libtpu: 0.0.40
codegen_flags: <defaults>
</compile_context>

<pallas_src>
import functools

import jax
import jax.numpy as jnp
from jax import lax
from jax.experimental import pallas as pl
from jax.experimental.pallas import tpu as pltpu


def _edge_loss_kernel(img1_ref, img2_ref, out_ref, gp_ref, *, H, W, NB, R0, C0):
    # Zero only the 1-pixel border of the used (H+2, W+2) window. The interior
    # is fully overwritten by every edge_map call, so a full-plane clear would
    # only burn vector-store slots.
    zrow = jnp.zeros((1, W + 2), jnp.float32)
    zcol = jnp.zeros((H + 2, 1), jnp.float32)
    gp_ref[R0 - 1:R0, C0 - 1:C0 + W + 1] = zrow              # top border
    gp_ref[R0 + H:R0 + H + 1, C0 - 1:C0 + W + 1] = zrow      # bottom border
    gp_ref[R0 - 1:R0 + H + 1, C0 - 1:C0] = zcol              # left border
    gp_ref[R0 - 1:R0 + H + 1, C0 + W:C0 + W + 1] = zcol      # right border

    def edge_map(img):                               # img: (C, H, W) value
        x = jnp.clip((img.astype(jnp.float32) + 1.0) * 0.5, 0.0, 1.0)
        g = jnp.mean(x, axis=0)                      # grayscale (H, W)
        # (8,128)-aligned interior store: no rotate of g before the vst.
        gp_ref[R0:R0 + H, C0:C0 + W] = g
        gp = gp_ref[R0 - 1:R0 + H + 1, C0 - 1:C0 + W + 1]    # (H+2, W+2)
        # Separable Sobel (cross-correlation, like F.conv2d with padding=1):
        #   sobel_x = [[1,0,-1],[2,0,-2],[1,0,-1]]
        #   sobel_y = [[1,2,1],[0,0,0],[-1,-2,-1]]
        d_col = gp[:, 0:W] - gp[:, 2:W + 2]                          # (H+2, W)
        s_col = gp[:, 0:W] + 2.0 * gp[:, 1:W + 1] + gp[:, 2:W + 2]   # (H+2, W)
        gx = d_col[0:H, :] + 2.0 * d_col[1:H + 1, :] + d_col[2:H + 2, :]
        gy = s_col[0:H, :] - s_col[2:H + 2, :]
        return jnp.sqrt(gx * gx + gy * gy)           # (H, W)

    def body(i, acc):
        return acc + jnp.abs(edge_map(img1_ref[i]) - edge_map(img2_ref[i]))

    # fori_loop bounds live ranges of per-image intermediates; unroll=True
    # keeps LLO scheduling visibility (NB is small and static).
    acc = lax.fori_loop(0, NB, body, jnp.zeros((H, W), jnp.float32),
                        unroll=True)
    out_ref[0, 0] = jnp.sum(acc)                     # one cross-lane reduce


def edge_loss(img1, img2, *, max_images_per_block=16, block_budget_bytes=None):
    """EdgeLoss forward. img1, img2: (B, C, H, W) NCHW (PyTorch layout)."""
    B, C, H, W = img1.shape
    orig_B = B

    # Keep the input dtype for DMA (upcast happens inside the kernel); only
    # promote to a common floating dtype if the inputs disagree / are integer.
    common = jnp.promote_types(img1.dtype, img2.dtype)
    if not jnp.issubdtype(common, jnp.floating):
        common = jnp.float32
    if img1.dtype != common:
        img1 = img1.astype(common)
    if img2.dtype != common:
        img2 = img2.astype(common)

    # Generation-aware budgets (v7x: 64 MiB VMEM/TC, v5e/v6e: 128 MiB).
    try:
        vmem_cap = int(pltpu.get_tpu_info().vmem_capacity_bytes)
    except Exception:  # off-device tracing / API drift fallback
        vmem_cap = 64 << 20
    if block_budget_bytes is None:
        block_budget_bytes = max(1 << 20, vmem_cap // 16)

    itemsize = jnp.dtype(common).itemsize
    img_bytes = C * H * W * itemsize

    # Images per grid step: amortize the ~0.35us per-step overhead while
    # keeping the double-buffered block within budget and the unrolled inner
    # loop at a sane code size.  No divisor constraint on B.
    nb = max(1, min(max_images_per_block, block_budget_bytes // img_bytes, B))
    grid = -(-B // nb)
    nb = -(-B // grid)          # re-balance to minimize batch padding
    padded_B = grid * nb
    if padded_B != B:
        pad = padded_B - B
        zpad1 = jnp.zeros((pad, C, H, W), img1.dtype)
        zpad2 = jnp.zeros((pad, C, H, W), img2.dtype)
        img1 = jnp.concatenate([img1, zpad1], axis=0)
        img2 = jnp.concatenate([img2, zpad2], axis=0)
        # Identical zero image pairs give |e1 - e2| == 0 exactly, so the sum
        # is unchanged; normalization below still uses the original B.

    # Aligned scratch window: grayscale lives at rows [R0, R0+H),
    # cols [C0, C0+W), with a zero border at rows R0-1 / R0+H and
    # cols C0-1 / C0+W.
    R0, C0 = 8, 128
    sh, sw = R0 + H + 1, C0 + W + 1
    scratch_bytes = ((sh + 7) // 8 * 8) * ((sw + 127) // 128 * 128) * 4

    # 2 inputs x 2 pipeline buffers x block + scratch + headroom.
    block_bytes = nb * img_bytes
    vmem_need = 4 * block_bytes + scratch_bytes + (2 << 20)
    vmem_limit = int(min(max(vmem_need, 16 << 20),
                         max(int(0.75 * vmem_cap), 16 << 20)))

    # TODO(synk): for very large images (nb == 1 still over budget) tile H with
    # a 2-row halo so double-buffering survives v7x's 64 MiB VMEM.
    # TODO(synk): for W < 128, pack several images side-by-side along the lane
    # axis (with 2-column zero gaps) for lane-dense vregs and larger DMA rows.
    # TODO(synk): on v7x, switch the batch axis to pltpu.CORE_PARALLEL (or
    # pl.core_map over create_tensorcore_mesh) to split the grid across both
    # TensorCores; plain "parallel" is kept here for portability.

    kernel = functools.partial(_edge_loss_kernel, H=H, W=W, NB=nb, R0=R0, C0=C0)
    partial = pl.pallas_call(
        kernel,
        out_shape=jax.ShapeDtypeStruct((grid, 1), jnp.float32),
        grid_spec=pltpu.PrefetchScalarGridSpec(
            num_scalar_prefetch=0,
            grid=(grid,),                    # independent per-step partials
            in_specs=[
                pl.BlockSpec((nb, C, H, W), lambda g: (g, 0, 0, 0)),
                pl.BlockSpec((nb, C, H, W), lambda g: (g, 0, 0, 0)),
            ],
            out_specs=pl.BlockSpec((1, 1), lambda g: (g, 0),
                                   memory_space=pltpu.SMEM),
            scratch_shapes=[pltpu.VMEM((sh, sw), jnp.float32)],
        ),
        compiler_params=pltpu.CompilerParams(
            dimension_semantics=("parallel",),   # each step is race-free
            vmem_limit_bytes=vmem_limit),
    )(img1, img2)

    return jnp.sum(partial) / jnp.float32(orig_B * H * W)


def edge_loss_ref(img1, img2):
    """Pure-JAX reference mirroring the PyTorch module."""
    sobel_x = jnp.array([[1, 0, -1], [2, 0, -2], [1, 0, -1]],
                        jnp.float32).reshape(1, 1, 3, 3)
    sobel_y = jnp.array([[1, 2, 1], [0, 0, 0], [-1, -2, -1]],
                        jnp.float32).reshape(1, 1, 3, 3)

    def prep(x):
        x = jnp.clip((x.astype(jnp.float32) + 1.0) / 2.0, 0.0, 1.0)
        return jnp.mean(x, axis=1, keepdims=True)

    def conv(g, k):
        return lax.conv_general_dilated(
            g, k, window_strides=(1, 1), padding=((1, 1), (1, 1)),
            dimension_numbers=("NCHW", "OIHW", "NCHW"))

    g1, g2 = prep(img1), prep(img2)
    e1 = jnp.sqrt(conv(g1, sobel_x) ** 2 + conv(g1, sobel_y) ** 2)
    e2 = jnp.sqrt(conv(g2, sobel_x) ** 2 + conv(g2, sobel_y) ** 2)
    return jnp.mean(jnp.abs(e1 - e2))


if __name__ == "__main__":
    key = jax.random.PRNGKey(0)
    k1, k2 = jax.random.split(key)
    B, C, H, W = 2, 4, 16, 16
    # values in ~[-1.5, 1.5] so the clamp path is exercised
    img1 = 1.5 * jax.random.normal(k1, (B, C, H, W), dtype=jnp.float32)
    img2 = 1.5 * jax.random.normal(k2, (B, C, H, W), dtype=jnp.float32)

    loss = jax.block_until_ready(edge_loss(img1, img2))
    ref = jax.block_until_ready(edge_loss_ref(img1, img2))

    assert jnp.isfinite(loss), "kernel produced non-finite loss"
    assert jnp.allclose(loss, ref, rtol=1e-4, atol=1e-5), (loss, ref)
    print("KERNEL_OK")
</pallas_src>

<mosaic_0001>
module attributes {stable_mosaic.version = 11 : i64} {
  func.func @_edge_loss_kernel(%arg0: i32, %arg1: memref<2x4x16x16xf32, #tpu.memory_space<vmem>>, %arg2: memref<2x4x16x16xf32, #tpu.memory_space<vmem>>, %arg3: memref<1x1xf32, #tpu.memory_space<smem>>, %arg4: memref<25x145xf32, #tpu.memory_space<vmem>>) attributes {dimension_semantics = [#tpu.dimension_semantics<parallel>], iteration_bounds = array<i64: 1>, scalar_prefetch = 0 : i64, scratch_operands = 1 : i64, tpu.core_type = #tpu.core_type<tc>, window_params = [{transform_indices = @transform_0, window_bounds = array<i64: 2, 4, 16, 16>}, {transform_indices = @transform_1, window_bounds = array<i64: 2, 4, 16, 16>}, {transform_indices = @transform_2, window_bounds = array<i64: 1, 1>}]} {
    %cst = arith.constant 0.000000e+00 : f32
    %0 = vector.broadcast %cst : f32 to vector<1x18xf32>
    %cst_0 = arith.constant 0.000000e+00 : f32
    %1 = vector.broadcast %cst_0 : f32 to vector<18x1xf32>
    %c7 = arith.constant 7 : index
    %c127 = arith.constant 127 : index
    %2 = vector.load %arg4[%c7, %c127] : memref<25x145xf32, #tpu.memory_space<vmem>>, vector<1x18xf32>
    tpu.vector_store %arg4[%c7, %c127], %0 {strides = array<i32>} : memref<25x145xf32, #tpu.memory_space<vmem>>, vector<1x18xf32>,
    %c24 = arith.constant 24 : index
    %c127_1 = arith.constant 127 : index
    %3 = vector.load %arg4[%c24, %c127_1] : memref<25x145xf32, #tpu.memory_space<vmem>>, vector<1x18xf32>
    tpu.vector_store %arg4[%c24, %c127_1], %0 {strides = array<i32>} : memref<25x145xf32, #tpu.memory_space<vmem>>, vector<1x18xf32>,
    %c7_2 = arith.constant 7 : index
    %c127_3 = arith.constant 127 : index
    %4 = vector.load %arg4[%c7_2, %c127_3] : memref<25x145xf32, #tpu.memory_space<vmem>>, vector<18x1xf32>
    tpu.vector_store %arg4[%c7_2, %c127_3], %1 {strides = array<i32>} : memref<25x145xf32, #tpu.memory_space<vmem>>, vector<18x1xf32>,
    %c7_4 = arith.constant 7 : index
    %c144 = arith.constant 144 : index
    %5 = vector.load %arg4[%c7_4, %c144] : memref<25x145xf32, #tpu.memory_space<vmem>>, vector<18x1xf32>
    tpu.vector_store %arg4[%c7_4, %c144], %1 {strides = array<i32>} : memref<25x145xf32, #tpu.memory_space<vmem>>, vector<18x1xf32>,
    %cst_5 = arith.constant 0.000000e+00 : f32
    %6 = vector.broadcast %cst_5 : f32 to vector<16x16xf32>
    %c0_i32 = arith.constant 0 : i32
    %7 = arith.index_cast %c0_i32 : i32 to index
    %c0 = arith.constant 0 : index
    %c0_6 = arith.constant 0 : index
    %c0_7 = arith.constant 0 : index
    %8 = vector.load %arg1[%7, %c0, %c0_6, %c0_7] : memref<2x4x16x16xf32, #tpu.memory_space<vmem>>, vector<1x4x16x16xf32>
    %9 = vector.shape_cast %8 : vector<1x4x16x16xf32> to vector<4x16x16xf32>
    %cst_8 = arith.constant 1.000000e+00 : f32
    %10 = vector.broadcast %cst_8 : f32 to vector<4x16x16xf32>
    %11 = arith.addf %9, %10 : vector<4x16x16xf32>
    %cst_9 = arith.constant 5.000000e-01 : f32
    %12 = vector.broadcast %cst_9 : f32 to vector<4x16x16xf32>
    %13 = arith.mulf %11, %12 : vector<4x16x16xf32>
    %cst_10 = arith.constant 0.000000e+00 : f32
    %cst_11 = arith.constant 1.000000e+00 : f32
    %14 = vector.broadcast %cst_10 : f32 to vector<4x16x16xf32>
    %15 = arith.maximumf %14, %13 : vector<4x16x16xf32>
    %16 = vector.broadcast %cst_11 : f32 to vector<4x16x16xf32>
    %17 = arith.minimumf %16, %15 : vector<4x16x16xf32>
    %cst_12 = arith.constant dense<0.000000e+00> : vector<16x16xf32>
    %18 = vector.multi_reduction <add>, %17, %cst_12 [0] : vector<4x16x16xf32> to vector<16x16xf32>
    %cst_13 = arith.constant 4.000000e+00 : f32
    %19 = vector.broadcast %cst_13 : f32 to vector<16x16xf32>
    %20 = arith.divf %18, %19 : vector<16x16xf32>
    %c8 = arith.constant 8 : index
    %c128 = arith.constant 128 : index
    %21 = vector.load %arg4[%c8, %c128] : memref<25x145xf32, #tpu.memory_space<vmem>>, vector<16x16xf32>
    tpu.vector_store %arg4[%c8, %c128], %20 {strides = array<i32>} : memref<25x145xf32, #tpu.memory_space<vmem>>, vector<16x16xf32>,
    %c7_14 = arith.constant 7 : index
    %c127_15 = arith.constant 127 : index
    %22 = vector.load %arg4[%c7_14, %c127_15] : memref<25x145xf32, #tpu.memory_space<vmem>>, vector<18x18xf32>
    %23 = vector.extract_strided_slice %22 {offsets = [0, 0], sizes = [18, 16], strides = [1, 1]} : vector<18x18xf32> to vector<18x16xf32>
    %24 = vector.extract_strided_slice %22 {offsets = [0, 2], sizes = [18, 16], strides = [1, 1]} : vector<18x18xf32> to vector<18x16xf32>
    %25 = arith.subf %23, %24 : vector<18x16xf32>
    %26 = vector.extract_strided_slice %22 {offsets = [0, 0], sizes = [18, 16], strides = [1, 1]} : vector<18x18xf32> to vector<18x16xf32>
    %27 = vector.extract_strided_slice %22 {offsets = [0, 1], sizes = [18, 16], strides = [1, 1]} : vector<18x18xf32> to vector<18x16xf32>
    %cst_16 = arith.constant 2.000000e+00 : f32
    %28 = vector.broadcast %cst_16 : f32 to vector<18x16xf32>
    %29 = arith.mulf %28, %27 : vector<18x16xf32>
    %30 = arith.addf %26, %29 : vector<18x16xf32>
    %31 = vector.extract_strided_slice %22 {offsets = [0, 2], sizes = [18, 16], strides = [1, 1]} : vector<18x18xf32> to vector<18x16xf32>
    %32 = arith.addf %30, %31 : vector<18x16xf32>
    %33 = vector.extract_strided_slice %25 {offsets = [0, 0], sizes = [16, 16], strides = [1, 1]} : vector<18x16xf32> to vector<16x16xf32>
    %34 = vector.extract_strided_slice %25 {offsets = [1, 0], sizes = [16, 16], strides = [1, 1]} : vector<18x16xf32> to vector<16x16xf32>
    %cst_17 = arith.constant 2.000000e+00 : f32
    %35 = vector.broadcast %cst_17 : f32 to vector<16x16xf32>
    %36 = arith.mulf %35, %34 : vector<16x16xf32>
    %37 = arith.addf %33, %36 : vector<16x16xf32>
    %38 = vector.extract_strided_slice %25 {offsets = [2, 0], sizes = [16, 16], strides = [1, 1]} : vector<18x16xf32> to vector<16x16xf32>
    %39 = arith.addf %37, %38 : vector<16x16xf32>
    %40 = vector.extract_strided_slice %32 {offsets = [0, 0], sizes = [16, 16], strides = [1, 1]} : vector<18x16xf32> to vector<16x16xf32>
    %41 = vector.extract_strided_slice %32 {offsets = [2, 0], sizes = [16, 16], strides = [1, 1]} : vector<18x16xf32> to vector<16x16xf32>
    %42 = arith.subf %40, %41 : vector<16x16xf32>
    %43 = arith.mulf %39, %39 : vector<16x16xf32>
    %44 = arith.mulf %42, %42 : vector<16x16xf32>
    %45 = arith.addf %43, %44 : vector<16x16xf32>
    %46 = math.sqrt %45 : vector<16x16xf32>
    %47 = arith.index_cast %c0_i32 : i32 to index
    %c0_18 = arith.constant 0 : index
    %c0_19 = arith.constant 0 : index
    %c0_20 = arith.constant 0 : index
    %48 = vector.load %arg2[%47, %c0_18, %c0_19, %c0_20] : memref<2x4x16x16xf32, #tpu.memory_space<vmem>>, vector<1x4x16x16xf32>
    %49 = vector.shape_cast %48 : vector<1x4x16x16xf32> to vector<4x16x16xf32>
    %cst_21 = arith.constant 1.000000e+00 : f32
    %50 = vector.broadcast %cst_21 : f32 to vector<4x16x16xf32>
    %51 = arith.addf %49, %50 : vector<4x16x16xf32>
    %cst_22 = arith.constant 5.000000e-01 : f32
    %52 = vector.broadcast %cst_22 : f32 to vector<4x16x16xf32>
    %53 = arith.mulf %51, %52 : vector<4x16x16xf32>
    %cst_23 = arith.constant 0.000000e+00 : f32
    %cst_24 = arith.constant 1.000000e+00 : f32
    %54 = vector.broadcast %cst_23 : f32 to vector<4x16x16xf32>
    %55 = arith.maximumf %54, %53 : vector<4x16x16xf32>
    %56 = vector.broadcast %cst_24 : f32 to vector<4x16x16xf32>
    %57 = arith.minimumf %56, %55 : vector<4x16x16xf32>
    %cst_25 = arith.constant dense<0.000000e+00> : vector<16x16xf32>
    %58 = vector.multi_reduction <add>, %57, %cst_25 [0] : vector<4x16x16xf32> to vector<16x16xf32>
    %cst_26 = arith.constant 4.000000e+00 : f32
    %59 = vector.broadcast %cst_26 : f32 to vector<16x16xf32>
    %60 = arith.divf %58, %59 : vector<16x16xf32>
    %c8_27 = arith.constant 8 : index
    %c128_28 = arith.constant 128 : index
    %61 = vector.load %arg4[%c8_27, %c128_28] : memref<25x145xf32, #tpu.memory_space<vmem>>, vector<16x16xf32>
    tpu.vector_store %arg4[%c8_27, %c128_28], %60 {strides = array<i32>} : memref<25x145xf32, #tpu.memory_space<vmem>>, vector<16x16xf32>,
    %c7_29 = arith.constant 7 : index
    %c127_30 = arith.constant 127 : index
    %62 = vector.load %arg4[%c7_29, %c127_30] : memref<25x145xf32, #tpu.memory_space<vmem>>, vector<18x18xf32>
    %63 = vector.extract_strided_slice %62 {offsets = [0, 0], sizes = [18, 16], strides = [1, 1]} : vector<18x18xf32> to vector<18x16xf32>
    %64 = vector.extract_strided_slice %62 {offsets = [0, 2], sizes = [18, 16], strides = [1, 1]} : vector<18x18xf32> to vector<18x16xf32>
    %65 = arith.subf %63, %64 : vector<18x16xf32>
    %66 = vector.extract_strided_slice %62 {offsets = [0, 0], sizes = [18, 16], strides = [1, 1]} : vector<18x18xf32> to vector<18x16xf32>
    %67 = vector.extract_strided_slice %62 {offsets = [0, 1], sizes = [18, 16], strides = [1, 1]} : vector<18x18xf32> to vector<18x16xf32>
    %cst_31 = arith.constant 2.000000e+00 : f32
    %68 = vector.broadcast %cst_31 : f32 to vector<18x16xf32>
    %69 = arith.mulf %68, %67 : vector<18x16xf32>
    %70 = arith.addf %66, %69 : vector<18x16xf32>
    %71 = vector.extract_strided_slice %62 {offsets = [0, 2], sizes = [18, 16], strides = [1, 1]} : vector<18x18xf32> to vector<18x16xf32>
    %72 = arith.addf %70, %71 : vector<18x16xf32>
    %73 = vector.extract_strided_slice %65 {offsets = [0, 0], sizes = [16, 16], strides = [1, 1]} : vector<18x16xf32> to vector<16x16xf32>
    %74 = vector.extract_strided_slice %65 {offsets = [1, 0], sizes = [16, 16], strides = [1, 1]} : vector<18x16xf32> to vector<16x16xf32>
    %cst_32 = arith.constant 2.000000e+00 : f32
    %75 = vector.broadcast %cst_32 : f32 to vector<16x16xf32>
    %76 = arith.mulf %75, %74 : vector<16x16xf32>
    %77 = arith.addf %73, %76 : vector<16x16xf32>
    %78 = vector.extract_strided_slice %65 {offsets = [2, 0], sizes = [16, 16], strides = [1, 1]} : vector<18x16xf32> to vector<16x16xf32>
    %79 = arith.addf %77, %78 : vector<16x16xf32>
    %80 = vector.extract_strided_slice %72 {offsets = [0, 0], sizes = [16, 16], strides = [1, 1]} : vector<18x16xf32> to vector<16x16xf32>
    %81 = vector.extract_strided_slice %72 {offsets = [2, 0], sizes = [16, 16], strides = [1, 1]} : vector<18x16xf32> to vector<16x16xf32>
    %82 = arith.subf %80, %81 : vector<16x16xf32>
    %83 = arith.mulf %79, %79 : vector<16x16xf32>
    %84 = arith.mulf %82, %82 : vector<16x16xf32>
    %85 = arith.addf %83, %84 : vector<16x16xf32>
    %86 = math.sqrt %85 : vector<16x16xf32>
    %87 = arith.subf %46, %86 : vector<16x16xf32>
    %88 = math.absf %87 : vector<16x16xf32>
    %89 = arith.addf %6, %88 : vector<16x16xf32>
    %c1_i32 = arith.constant 1 : i32
    %90 = arith.index_cast %c1_i32 : i32 to index
    %c0_33 = arith.constant 0 : index
    %c0_34 = arith.constant 0 : index
    %c0_35 = arith.constant 0 : index
    %91 = vector.load %arg1[%90, %c0_33, %c0_34, %c0_35] : memref<2x4x16x16xf32, #tpu.memory_space<vmem>>, vector<1x4x16x16xf32>
    %92 = vector.shape_cast %91 : vector<1x4x16x16xf32> to vector<4x16x16xf32>
    %cst_36 = arith.constant 1.000000e+00 : f32
    %93 = vector.broadcast %cst_36 : f32 to vector<4x16x16xf32>
    %94 = arith.addf %92, %93 : vector<4x16x16xf32>
    %cst_37 = arith.constant 5.000000e-01 : f32
    %95 = vector.broadcast %cst_37 : f32 to vector<4x16x16xf32>
    %96 = arith.mulf %94, %95 : vector<4x16x16xf32>
    %cst_38 = arith.constant 0.000000e+00 : f32
    %cst_39 = arith.constant 1.000000e+00 : f32
    %97 = vector.broadcast %cst_38 : f32 to vector<4x16x16xf32>
    %98 = arith.maximumf %97, %96 : vector<4x16x16xf32>
    %99 = vector.broadcast %cst_39 : f32 to vector<4x16x16xf32>
    %100 = arith.minimumf %99, %98 : vector<4x16x16xf32>
    %cst_40 = arith.constant dense<0.000000e+00> : vector<16x16xf32>
    %101 = vector.multi_reduction <add>, %100, %cst_40 [0] : vector<4x16x16xf32> to vector<16x16xf32>
    %cst_41 = arith.constant 4.000000e+00 : f32
    %102 = vector.broadcast %cst_41 : f32 to vector<16x16xf32>
    %103 = arith.divf %101, %102 : vector<16x16xf32>
    %c8_42 = arith.constant 8 : index
    %c128_43 = arith.constant 128 : index
    %104 = vector.load %arg4[%c8_42, %c128_43] : memref<25x145xf32, #tpu.memory_space<vmem>>, vector<16x16xf32>
    tpu.vector_store %arg4[%c8_42, %c128_43], %103 {strides = array<i32>} : memref<25x145xf32, #tpu.memory_space<vmem>>, vector<16x16xf32>,
    %c7_44 = arith.constant 7 : index
    %c127_45 = arith.constant 127 : index
    %105 = vector.load %arg4[%c7_44, %c127_45] : memref<25x145xf32, #tpu.memory_space<vmem>>, vector<18x18xf32>
    %106 = vector.extract_strided_slice %105 {offsets = [0, 0], sizes = [18, 16], strides = [1, 1]} : vector<18x18xf32> to vector<18x16xf32>
    %107 = vector.extract_strided_slice %105 {offsets = [0, 2], sizes = [18, 16], strides = [1, 1]} : vector<18x18xf32> to vector<18x16xf32>
    %108 = arith.subf %106, %107 : vector<18x16xf32>
    %109 = vector.extract_strided_slice %105 {offsets = [0, 0], sizes = [18, 16], strides = [1, 1]} : vector<18x18xf32> to vector<18x16xf32>
    %110 = vector.extract_strided_slice %105 {offsets = [0, 1], sizes = [18, 16], strides = [1, 1]} : vector<18x18xf32> to vector<18x16xf32>
    %cst_46 = arith.constant 2.000000e+00 : f32
    %111 = vector.broadcast %cst_46 : f32 to vector<18x16xf32>
    %112 = arith.mulf %111, %110 : vector<18x16xf32>
    %113 = arith.addf %109, %112 : vector<18x16xf32>
    %114 = vector.extract_strided_slice %105 {offsets = [0, 2], sizes = [18, 16], strides = [1, 1]} : vector<18x18xf32> to vector<18x16xf32>
    %115 = arith.addf %113, %114 : vector<18x16xf32>
    %116 = vector.extract_strided_slice %108 {offsets = [0, 0], sizes = [16, 16], strides = [1, 1]} : vector<18x16xf32> to vector<16x16xf32>
    %117 = vector.extract_strided_slice %108 {offsets = [1, 0], sizes = [16, 16], strides = [1, 1]} : vector<18x16xf32> to vector<16x16xf32>
    %cst_47 = arith.constant 2.000000e+00 : f32
    %118 = vector.broadcast %cst_47 : f32 to vector<16x16xf32>
    %119 = arith.mulf %118, %117 : vector<16x16xf32>
    %120 = arith.addf %116, %119 : vector<16x16xf32>
    %121 = vector.extract_strided_slice %108 {offsets = [2, 0], sizes = [16, 16], strides = [1, 1]} : vector<18x16xf32> to vector<16x16xf32>
    %122 = arith.addf %120, %121 : vector<16x16xf32>
    %123 = vector.extract_strided_slice %115 {offsets = [0, 0], sizes = [16, 16], strides = [1, 1]} : vector<18x16xf32> to vector<16x16xf32>
    %124 = vector.extract_strided_slice %115 {offsets = [2, 0], sizes = [16, 16], strides = [1, 1]} : vector<18x16xf32> to vector<16x16xf32>
    %125 = arith.subf %123, %124 : vector<16x16xf32>
    %126 = arith.mulf %122, %122 : vector<16x16xf32>
    %127 = arith.mulf %125, %125 : vector<16x16xf32>
    %128 = arith.addf %126, %127 : vector<16x16xf32>
    %129 = math.sqrt %128 : vector<16x16xf32>
    %130 = arith.index_cast %c1_i32 : i32 to index
    %c0_48 = arith.constant 0 : index
    %c0_49 = arith.constant 0 : index
    %c0_50 = arith.constant 0 : index
    %131 = vector.load %arg2[%130, %c0_48, %c0_49, %c0_50] : memref<2x4x16x16xf32, #tpu.memory_space<vmem>>, vector<1x4x16x16xf32>
    %132 = vector.shape_cast %131 : vector<1x4x16x16xf32> to vector<4x16x16xf32>
    %cst_51 = arith.constant 1.000000e+00 : f32
    %133 = vector.broadcast %cst_51 : f32 to vector<4x16x16xf32>
    %134 = arith.addf %132, %133 : vector<4x16x16xf32>
    %cst_52 = arith.constant 5.000000e-01 : f32
    %135 = vector.broadcast %cst_52 : f32 to vector<4x16x16xf32>
    %136 = arith.mulf %134, %135 : vector<4x16x16xf32>
    %cst_53 = arith.constant 0.000000e+00 : f32
    %cst_54 = arith.constant 1.000000e+00 : f32
    %137 = vector.broadcast %cst_53 : f32 to vector<4x16x16xf32>
    %138 = arith.maximumf %137, %136 : vector<4x16x16xf32>
    %139 = vector.broadcast %cst_54 : f32 to vector<4x16x16xf32>
    %140 = arith.minimumf %139, %138 : vector<4x16x16xf32>
    %cst_55 = arith.constant dense<0.000000e+00> : vector<16x16xf32>
    %141 = vector.multi_reduction <add>, %140, %cst_55 [0] : vector<4x16x16xf32> to vector<16x16xf32>
    %cst_56 = arith.constant 4.000000e+00 : f32
    %142 = vector.broadcast %cst_56 : f32 to vector<16x16xf32>
    %143 = arith.divf %141, %142 : vector<16x16xf32>
    %c8_57 = arith.constant 8 : index
    %c128_58 = arith.constant 128 : index
    %144 = vector.load %arg4[%c8_57, %c128_58] : memref<25x145xf32, #tpu.memory_space<vmem>>, vector<16x16xf32>
    tpu.vector_store %arg4[%c8_57, %c128_58], %143 {strides = array<i32>} : memref<25x145xf32, #tpu.memory_space<vmem>>, vector<16x16xf32>,
    %c7_59 = arith.constant 7 : index
    %c127_60 = arith.constant 127 : index
    %145 = vector.load %arg4[%c7_59, %c127_60] : memref<25x145xf32, #tpu.memory_space<vmem>>, vector<18x18xf32>
    %146 = vector.extract_strided_slice %145 {offsets = [0, 0], sizes = [18, 16], strides = [1, 1]} : vector<18x18xf32> to vector<18x16xf32>
    %147 = vector.extract_strided_slice %145 {offsets = [0, 2], sizes = [18, 16], strides = [1, 1]} : vector<18x18xf32> to vector<18x16xf32>
    %148 = arith.subf %146, %147 : vector<18x16xf32>
    %149 = vector.extract_strided_slice %145 {offsets = [0, 0], sizes = [18, 16], strides = [1, 1]} : vector<18x18xf32> to vector<18x16xf32>
    %150 = vector.extract_strided_slice %145 {offsets = [0, 1], sizes = [18, 16], strides = [1, 1]} : vector<18x18xf32> to vector<18x16xf32>
    %cst_61 = arith.constant 2.000000e+00 : f32
    %151 = vector.broadcast %cst_61 : f32 to vector<18x16xf32>
    %152 = arith.mulf %151, %150 : vector<18x16xf32>
    %153 = arith.addf %149, %152 : vector<18x16xf32>
    %154 = vector.extract_strided_slice %145 {offsets = [0, 2], sizes = [18, 16], strides = [1, 1]} : vector<18x18xf32> to vector<18x16xf32>
    %155 = arith.addf %153, %154 : vector<18x16xf32>
    %156 = vector.extract_strided_slice %148 {offsets = [0, 0], sizes = [16, 16], strides = [1, 1]} : vector<18x16xf32> to vector<16x16xf32>
    %157 = vector.extract_strided_slice %148 {offsets = [1, 0], sizes = [16, 16], strides = [1, 1]} : vector<18x16xf32> to vector<16x16xf32>
    %cst_62 = arith.constant 2.000000e+00 : f32
    %158 = vector.broadcast %cst_62 : f32 to vector<16x16xf32>
    %159 = arith.mulf %158, %157 : vector<16x16xf32>
    %160 = arith.addf %156, %159 : vector<16x16xf32>
    %161 = vector.extract_strided_slice %148 {offsets = [2, 0], sizes = [16, 16], strides = [1, 1]} : vector<18x16xf32> to vector<16x16xf32>
    %162 = arith.addf %160, %161 : vector<16x16xf32>
    %163 = vector.extract_strided_slice %155 {offsets = [0, 0], sizes = [16, 16], strides = [1, 1]} : vector<18x16xf32> to vector<16x16xf32>
    %164 = vector.extract_strided_slice %155 {offsets = [2, 0], sizes = [16, 16], strides = [1, 1]} : vector<18x16xf32> to vector<16x16xf32>
    %165 = arith.subf %163, %164 : vector<16x16xf32>
    %166 = arith.mulf %162, %162 : vector<16x16xf32>
    %167 = arith.mulf %165, %165 : vector<16x16xf32>
    %168 = arith.addf %166, %167 : vector<16x16xf32>
    %169 = math.sqrt %168 : vector<16x16xf32>
    %170 = arith.subf %129, %169 : vector<16x16xf32>
    %171 = math.absf %170 : vector<16x16xf32>
    %172 = arith.addf %89, %171 : vector<16x16xf32>
    %c2_i32 = arith.constant 2 : i32
    %173 = vector.shape_cast %172 : vector<16x16xf32> to vector<1x16x16xf32>
    %cst_63 = arith.constant dense<0.000000e+00> : vector<1xf32>
    %174 = vector.multi_reduction <add>, %173, %cst_63 [1, 2] : vector<1x16x16xf32> to vector<1xf32>
    %175 = vector.shape_cast %174 : vector<1xf32> to vector<1x1x1xf32>
    %176 = vector.extract %175[0, 0, 0] : f32 from vector<1x1x1xf32>
    %c0_64 = arith.constant 0 : index
    %c0_65 = arith.constant 0 : index
    %177 = memref.load %arg3[%c0_64, %c0_65] : memref<1x1xf32, #tpu.memory_space<smem>>
    memref.store %176, %arg3[%c0_64, %c0_65] : memref<1x1xf32, #tpu.memory_space<smem>>
    return
  }
  func.func @transform_0(%arg0: i32) -> (i32, i32, i32, i32) {
    %c0_i32 = arith.constant 0 : i32
    %c0_i32_0 = arith.constant 0 : i32
    %c0_i32_1 = arith.constant 0 : i32
    %c0_i32_2 = arith.constant 0 : i32
    return %arg0, %c0_i32, %c0_i32_0, %c0_i32_1 : i32, i32, i32, i32
  }
  func.func @transform_1(%arg0: i32) -> (i32, i32, i32, i32) {
    %c0_i32 = arith.constant 0 : i32
    %c0_i32_0 = arith.constant 0 : i32
    %c0_i32_1 = arith.constant 0 : i32
    %c0_i32_2 = arith.constant 0 : i32
    return %arg0, %c0_i32, %c0_i32_0, %c0_i32_1 : i32, i32, i32, i32
  }
  func.func @transform_2(%arg0: i32) -> (i32, i32) {
    %c0_i32 = arith.constant 0 : i32
    %c0_i32_0 = arith.constant 0 : i32
    return %arg0, %c0_i32 : i32, i32
  }
}

</mosaic_0001>

<bundles_post_ra>
// kernel: tpu_custom_call.1
= control target key start
LH: loop header
LB: loop body
LE: loop exit
PB: predicated region body
PF: predicated region fallthrough
CT: control target
= control target key end

     0   :  { %7 = vsyncpa [#allocation4], 0  ;;  %s2208_s0 = inlined_call_operand.hbm [shape: f32[2,4,16,16], index: 0, kind: input, shape index: {}]   ;;  %s2209_s1 = inlined_call_operand.hbm [shape: f32[2,4,16,16], index: 1, kind: input, shape index: {}]   ;;  %s2210_s2 = inlined_call_operand.hbm [shape: f32[1,1], index: 2, kind: output, shape index: {}]  }
   0x1   :  { %8 = vsyncpa [#allocation7], 0 }
   0x2   :  { %9 = vsyncpa [#allocation5], 0  ;;  %s1351_s9 = smov [#allocation3]   ;;  %s1291_s13 = scalar_lea.hbm %s2208_s0, 2048 }
   0x3   :  { %s15_s10 = sshll.u32 %s1351_s9, 4  ;;  %p1292_p0 = scmp.ne.s32.totalorder %s2208_s0, %s1291_s13  ;;  %s16_s10 = int_to_ptr.vmem [resolvable:$true] %s15_s10 }
   0x4   :  { %p1295_p1 = scmp.lt.u32.totalorder %s1291_s13, %s2208_s0 }
   0x6   :  { %p1297_p2 = pnand %p1295_p1, %p1292_p0 }
   0x8   :  { %1300 = shalt.err (!%p1297_p2)
}
   0x9   :  { %s1301_s18 = scalar_lea.vmem %s16_s10, 2048  ;;  %p1306_p4 = scmp.lt.s32.totalorder %s16_s10, %s16_s10 }
   0xa   :  { %p1302_p3 = scmp.ne.s32.totalorder %s16_s10, %s1301_s18  ;;  %p1307_p5 = scmp.lt.s32.totalorder %s1301_s18, %s1301_s18 }
   0xc   :  { %p1308_p6 = por %p1307_p5, %p1306_p4 }
   0xe   :  { %p1309_p7 = pnand %p1308_p6, %p1302_p3 }
  0x10   :  { %1312 = shalt.err (!%p1309_p7)
}
  0x11   :  { %s1352_s19 = smov 128   ;;  %s1353_s20 = smov 8  }
  0x12   :  { %21 = dma.hbm_to_vmem [thread:$0]  %s2208_s0, 2048, %s16_s10, [#allocation4], %s1352_s19, %s1352_s19, %s1353_s20  }
  0x13   :  { %s1354_s23 = smov [#allocation6]   ;;  %s1313_s27 = scalar_lea.hbm %s2209_s1, 2048 }
  0x14   :  { %s27_s24 = sshll.u32 %s1354_s23, 4  ;;  %p1314_p8 = scmp.ne.s32.totalorder %s2209_s1, %s1313_s27  ;;  %s28_s24 = int_to_ptr.vmem [resolvable:$true] %s27_s24 }
  0x15   :  { %p1317_p9 = scmp.lt.u32.totalorder %s1313_s27, %s2209_s1 }
  0x17   :  { %p1319_p10 = pnand %p1317_p9, %p1314_p8 }
  0x19   :  { %1322 = shalt.err (!%p1319_p10)
}
  0x1a   :  { %s1323_s4 = scalar_lea.vmem %s28_s24, 2048  ;;  %p1328_p12 = scmp.lt.s32.totalorder %s28_s24, %s28_s24 }
  0x1b   :  { %p1324_p11 = scmp.ne.s32.totalorder %s28_s24, %s1323_s4  ;;  %p1329_p13 = scmp.lt.s32.totalorder %s1323_s4, %s1323_s4 }
  0x1d   :  { %p1330_p0 = por %p1329_p13, %p1328_p12 }
  0x1f   :  { %p1331_p1 = pnand %p1330_p0, %p1324_p11 }
  0x21   :  { %1334 = shalt.err (!%p1331_p1)
}
  0x22   :  { %33 = dma.hbm_to_vmem [thread:$0]  %s2209_s1, 2048, %s28_s24, [#allocation7], %s1352_s19, %s1352_s19, %s1353_s20  }
  0x23   :  { %1345 = dma.done.wait [#allocation4], 2048  }
  0x24   :  { %1346 = vsyncadd [#allocation4], 4294965248 }
  0x25   :  { %1347 = dma.done.wait [#allocation7], 2048  }
  0x26   :  { %1348 = vsyncadd [#allocation7], 4294965248  ;;  %vm42_vm0 = vcmask 131072   ;;  %vm57_vm1 = vcmask 131200   ;;  %v1355_v0 = vmov 0.0   ;;  %vm52_vm2 = vcmask 138375  }
  0x27   :  { %45 = vst.msk [vmem:[#allocation2 + $0x38] sm:$0x1] %vm42_vm0, %v1355_v0  ;;  %43 = vst.msk [vmem:[#allocation2 + $0xf] sm:$0x1] %vm42_vm0, %v1355_v0  ;;  %vm54_vm3 = vcmask 138368   ;;  %vm40_vm4 = vcmask 1041400  }
  0x28   :  { %58 = vst.msk [vmem:[#allocation2 + $0x38] sm:$0x1] %vm57_vm1, %v1355_v0  ;;  %v59_v1 = vld [vmem:[#allocation3] sm:$0xff]  ;;  %v61_v2 = vld [vmem:[#allocation3 + $0x10] sm:$0xff]  ;;  %vm99_vm5 = vcmask 130048   ;;  %s1356_s1 = smov 126  }
  0x29   :  { %53 = vst.msk [vmem:[#allocation2 + $0x8] sm:$0x80] %vm52_vm2, %v1355_v0  ;;  %v63_v3 = vld [vmem:[#allocation3 + $0x20] sm:$0xff]  ;;  %v65_v4 = vld [vmem:[#allocation3 + $0x30] sm:$0xff]  ;;  %v67_v5 = vadd.f32 1.0, %v59_v1  ;;  %v69_v6 = vadd.f32 1.0, %v61_v2 }
  0x2a   :  { %55 = vst.msk [vmem:[#allocation2 + $0x18] sm:$0xff] %vm54_vm3, %v1355_v0  ;;  %56 = vst.msk [vmem:[#allocation2 + $0x28] sm:$0xff] %vm54_vm3, %v1355_v0  ;;  %v71_v7 = vadd.f32 1.0, %v63_v3  ;;  %v331_v8 = vld [vmem:[#allocation6] sm:$0xff]  ;;  %v333_v9 = vld [vmem:[#allocation6 + $0x10] sm:$0xff]  ;;  %v73_v17 = vadd.f32 1.0, %v65_v4 }
  0x2b   :  { %44 = vst.msk [vmem:[#allocation2 + $0x30] sm:$0x1] %vm40_vm4, %v1355_v0  ;;  %41 = vst.msk [vmem:[#allocation2 + $0x7] sm:$0x1] %vm40_vm4, %v1355_v0  ;;  %v75_v21 = vmul.f32 0.5, %v67_v5  ;;  %v77_v24 = vmul.f32 0.5, %v69_v6 }
  0x2c   :  { %51 = vst.msk [vmem:[#allocation2 + $0x30] sm:$0x1] %vm40_vm4, %v1355_v0  ;;  %v79_v25 = vmul.f32 0.5, %v71_v7  ;;  %v335_v26 = vld [vmem:[#allocation6 + $0x20] sm:$0xff]  ;;  %v337_v27 = vld [vmem:[#allocation6 + $0x30] sm:$0xff]  ;;  %v81_v28 = vmul.f32 0.5, %v73_v17 }
  0x2d   :  { %v83_v29 = vmax.f32 %v75_v21, 0.0  ;;  %v339_v30 = vadd.f32 1.0, %v331_v8  ;;  %v341_v31 = vadd.f32 1.0, %v333_v9  ;;  %s1357_s6 = smov 127   ;;  %v85_v32 = vmax.f32 %v77_v24, 0.0  ;;  %v60_v49 = vld [vmem:[#allocation3 + $0x8] sm:$0xff] }
  0x2e   :  { %v87_v33 = vmax.f32 %v79_v25, 0.0  ;;  %v343_v34 = vadd.f32 1.0, %v335_v26  ;;  %v345_v35 = vadd.f32 1.0, %v337_v27  ;;  %v89_v36 = vmax.f32 %v81_v28, 0.0  ;;  %v62_v54 = vld [vmem:[#allocation3 + $0x18] sm:$0xff]  ;;  %v64_v59 = vld [vmem:[#allocation3 + $0x28] sm:$0xff] }
  0x2f   :  { %v1408_v10 = vld [vmem:[#allocation2 + $0x38] sm:$0x1]  ;;  %v91_v37 = vmin.f32 %v83_v29, 1.0  ;;  %v347_v38 = vmul.f32 0.5, %v339_v30  ;;  %v349_v39 = vmul.f32 0.5, %v341_v31  ;;  %v93_v40 = vmin.f32 %v85_v32, 1.0 }
  0x30   :  { %v1410_v11 = vld [vmem:[#allocation2 + $0x38] sm:$0x1]  ;;  %407 = vrot.lane.b32.xlu1 %v1408_v10, %s1356_s1  ;;  %v424_v13 = vmul.f32 2.0, %v1408_v10  ;;  %v1424_v19 = vld [vmem:[#allocation2 + $0x8] sm:$0x80]  ;;  %v95_v41 = vmin.f32 %v87_v33, 1.0 }
  0x31   :  { %v1412_v12 = vld [vmem:[#allocation2 + $0x38] sm:$0x1]  ;;  %137 = vrot.lane.b32.xlu0 %v1410_v11, %s1356_s1  ;;  %v154_v14 = vmul.f32 2.0, %v1410_v11  ;;  %v1426_v20 = vld [vmem:[#allocation2 + $0x8] sm:$0x80]  ;;  %v1429_v22 = vmul.f32 2.0, %v1424_v19 }
  0x32   :  { %v980_v15 = vmul.f32 2.0, %v1412_v12  ;;  %v1421_v16 = vld [vmem:[#allocation2 + $0x38] sm:$0x1]  ;;  %v1432_v23 = vmul.f32 2.0, %v1426_v20  ;;  %v351_v42 = vmul.f32 0.5, %v343_v34  ;;  %v353_v43 = vmul.f32 0.5, %v345_v35 }
  0x33   :  { %v711_v18 = vmul.f32 2.0, %v1421_v16  ;;  %v1436_v44 = vld [vmem:[#allocation2 + $0x8] sm:$0x80]  ;;  %v97_v45 = vmin.f32 %v89_v36, 1.0  ;;  %v100_v46 = vsel %vm99_vm5, %v91_v37, 0.0  ;;  %v355_v47 = vmax.f32 %v347_v38, 0.0 }
  0x34   :  { %435 = vrot.lane.b32.xlu1 %v424_v13, %s1357_s6  ;;  %v357_v48 = vmax.f32 %v349_v39, 0.0  ;;  %v101_v50 = vsel %vm99_vm5, %v93_v40, 0.0  ;;  %v103_v51 = vsel %vm99_vm5, %v95_v41, 0.0  ;;  %v359_v52 = vmax.f32 %v351_v42, 0.0  ;;  %v66_v63 = vld [vmem:[#allocation3 + $0x38] sm:$0xff]  ;;  %v332_v6 = vld [vmem:[#allocation6 + $0x8] sm:$0xff] }
  0x35   :  { %165 = vrot.lane.b32.xlu0 %v154_v14, %s1357_s6  ;;  %v361_v53 = vmax.f32 %v353_v43, 0.0  ;;  %v102_v55 = vadd.f32 %v101_v50, %v100_v46  ;;  %v105_v56 = vsel %vm99_vm5, %v97_v45, 0.0  ;;  %v363_v57 = vmin.f32 %v355_v47, 1.0  ;;  %v334_v7 = vld [vmem:[#allocation6 + $0x18] sm:$0xff]  ;;  %v336_v24 = vld [vmem:[#allocation6 + $0x28] sm:$0xff]  ;;  %v618_v47 = vld [vmem:[#allocation3 + $0x40] sm:$0xff] }
  0x36   :  { %v365_v58 = vmin.f32 %v357_v48, 1.0  ;;  %v367_v60 = vmin.f32 %v359_v52, 1.0  ;;  %v1445_v62 = vmul.f32 2.0, %v1436_v44  ;;  %v68_v1 = vadd.f32 1.0, %v60_v49  ;;  %v338_v25 = vld [vmem:[#allocation6 + $0x38] sm:$0xff]  ;;  %s1358_s7 = smov 1  }
  0x37   :  { %v369_v61 = vmin.f32 %v361_v53, 1.0  ;;  %v104_v2 = vadd.f32 %v103_v51, %v102_v55  ;;  %v371_v3 = vsel %vm99_vm5, %v363_v57, 0.0  ;;  %v70_v5 = vadd.f32 1.0, %v62_v54  ;;  %v620_v51 = vld [vmem:[#allocation3 + $0x50] sm:$0xff]  ;;  %s1335_s11 = scalar_lea.hbm %s2210_s2, 16 }
  0x38   :  { %991 = vrot.lane.b32.xlu1 %v980_v15, %s1357_s6  ;;  %v372_v4 = vsel %vm99_vm5, %v365_v58, 0.0  ;;  %v374_v9 = vsel %vm99_vm5, %v367_v60, 0.0  ;;  %v72_v14 = vadd.f32 1.0, %v64_v59  ;;  %v74_v17 = vadd.f32 1.0, %v66_v63  ;;  %v624_v57 = vld [vmem:[#allocation3 + $0x70] sm:$0xff]  ;;  %p1336_p2 = scmp.ne.s32.totalorder %s2210_s2, %s1335_s11  ;;  %p1339_p3 = scmp.lt.u32.totalorder %s1335_s11, %s2210_s2 }
  0x39   :  { %722 = vrot.lane.b32.xlu0 %v711_v18, %s1357_s6  ;;  %v373_v8 = vadd.f32 %v372_v4, %v371_v3  ;;  %v376_v13 = vsel %vm99_vm5, %v369_v61, 0.0  ;;  %v106_v15 = vadd.f32 %v105_v56, %v104_v2  ;;  %v76_v18 = vmul.f32 0.5, %v68_v1  ;;  %v622_v56 = vld [vmem:[#allocation3 + $0x60] sm:$0xff] }
  0x3a   :  { %v78_v21 = vmul.f32 0.5, %v70_v5  ;;  %v80_v27 = vmul.f32 0.5, %v72_v14  ;;  %v340_v28 = vadd.f32 1.0, %v332_v6  ;;  %v342_v29 = vadd.f32 1.0, %v334_v7  ;;  %p1341_p4 = pnand %p1339_p3, %p1336_p2 }
  0x3b   :  { %v375_v26 = vadd.f32 %v374_v9, %v373_v8  ;;  %v115_v30 = vmul.f32 0.25, %v106_v15  ;;  %v82_v31 = vmul.f32 0.5, %v74_v17  ;;  %v84_v32 = vmax.f32 %v76_v18, 0.0  ;;  %v619_v15 = vld [vmem:[#allocation3 + $0x48] sm:$0xff]  ;;  %v621_v17 = vld [vmem:[#allocation3 + $0x58] sm:$0xff] }
  0x3c   :  { %963 = vrot.lane.b32.xlu1 %v1412_v12, %s1356_s1  ;;  %v86_v33 = vmax.f32 %v78_v21, 0.0  ;;  %v88_v35 = vmax.f32 %v80_v27, 0.0  ;;  %v344_v36 = vadd.f32 1.0, %v336_v24  ;;  %v346_v37 = vadd.f32 1.0, %v338_v25  ;;  %v623_v25 = vld [vmem:[#allocation3 + $0x68] sm:$0xff] }
  0x3d   :  { %694 = vrot.lane.b32.xlu0 %v1421_v16, %s1356_s1  ;;  %v377_v34 = vadd.f32 %v376_v13, %v375_v26  ;;  %117 = vst.msk [vmem:[#allocation2 + $0x18] sm:$0xff] %vm99_vm5, %v115_v30  ;;  %v90_v38 = vmax.f32 %v82_v31, 0.0  ;;  %v92_v39 = vmin.f32 %v84_v32, 1.0  ;;  %v348_v41 = vmul.f32 0.5, %v340_v28 }
  0x3e   :  { %v94_v40 = vmin.f32 %v86_v33, 1.0  ;;  %v96_v43 = vmin.f32 %v88_v35, 1.0  ;;  %v350_v45 = vmul.f32 0.5, %v342_v29  ;;  %v352_v46 = vmul.f32 0.5, %v344_v36  ;;  %v625_v29 = vld [vmem:[#allocation3 + $0x78] sm:$0xff] }
  0x3f   :  { %v385_v42 = vmul.f32 0.25, %v377_v34  ;;  %v98_v48 = vmin.f32 %v90_v38, 1.0  ;;  %v107_v49 = vsel %vm99_vm5, %v92_v39, 0.0  ;;  %v354_v50 = vmul.f32 0.5, %v346_v37 }
  0x40   :  { %159 = vrot.lane.b32.xlu1 %v1429_v22, %s1357_s6  ;;  %v108_v22 = vsel %vm99_vm5, %v94_v40, 0.0  ;;  %v110_v53 = vsel %vm99_vm5, %v96_v43, 0.0  ;;  %v356_v54 = vmax.f32 %v348_v41, 0.0  ;;  %v358_v55 = vmax.f32 %v350_v45, 0.0 }
  0x41   :  { %131 = vrot.lane.b32.xlu0 %v1424_v19, %s1356_s1  ;;  %v109_v52 = vadd.f32 %v108_v22, %v107_v49  ;;  %v112_v58 = vsel %vm99_vm5, %v98_v48, 0.0  ;;  %v360_v59 = vmax.f32 %v352_v46, 0.0  ;;  %v362_v60 = vmax.f32 %v354_v50, 0.0  ;;  %v887_v50 = vld [vmem:[#allocation6 + $0x40] sm:$0xff] }
  0x42   :  { %v626_v61 = vadd.f32 1.0, %v618_v47  ;;  %v364_v1 = vmin.f32 %v356_v54, 1.0  ;;  %v366_v2 = vmin.f32 %v358_v55, 1.0  ;;  %v628_v3 = vadd.f32 1.0, %v620_v51  ;;  %v889_v51 = vld [vmem:[#allocation6 + $0x50] sm:$0xff] }
  0x43   :  { %v111_v63 = vadd.f32 %v110_v53, %v109_v52  ;;  %v368_v4 = vmin.f32 %v360_v59, 1.0  ;;  %v370_v5 = vmin.f32 %v362_v60, 1.0  ;;  %v630_v6 = vadd.f32 1.0, %v622_v56  ;;  %v891_v60 = vld [vmem:[#allocation6 + $0x60] sm:$0xff] }
  0x44   :  { %429 = vrot.lane.b32.xlu1 %v1432_v23, %s1357_s6  ;;  %v632_v23 = vadd.f32 1.0, %v624_v57  ;;  %v1468_v7 = vld [vmem:[#allocation2 + $0x18] sm:$0xff]  ;;  %v378_v9 = vsel %vm99_vm5, %v364_v1, 0.0  ;;  %v379_v13 = vsel %vm99_vm5, %v366_v2, 0.0  ;;  %v634_v14 = vmul.f32 0.5, %v626_v61  ;;  %v893_v61 = vld [vmem:[#allocation6 + $0x70] sm:$0xff] }
  0x45   :  { %401 = vrot.lane.b32.xlu0 %v1426_v20, %s1356_s1  ;;  %v113_v8 = vadd.f32 %v112_v58, %v111_v63  ;;  %387 = vst.msk [vmem:[#allocation2 + $0x18] sm:$0xff] %vm99_vm5, %v385_v42  ;;  %v380_v18 = vadd.f32 %v379_v13, %v378_v9  ;;  %v381_v21 = vsel %vm99_vm5, %v368_v4, 0.0  ;;  %v383_v24 = vsel %vm99_vm5, %v370_v5, 0.0 }
  0x46   :  { %v636_v26 = vmul.f32 0.5, %v628_v3  ;;  %v638_v27 = vmul.f32 0.5, %v630_v6  ;;  %v640_v28 = vmul.f32 0.5, %v632_v23  ;;  %v642_v31 = vmax.f32 %v634_v14, 0.0 }
  0x47   :  { %v382_v30 = vadd.f32 %v381_v21, %v380_v18  ;;  %v627_v32 = vadd.f32 1.0, %v619_v15  ;;  %v629_v33 = vadd.f32 1.0, %v621_v17  ;;  %v631_v37 = vadd.f32 1.0, %v623_v25  ;;  %v888_v17 = vld [vmem:[#allocation6 + $0x48] sm:$0xff]  ;;  %v890_v18 = vld [vmem:[#allocation6 + $0x58] sm:$0xff] }
  0x48   :  { %716 = vrot.lane.b32.xlu1 %v1445_v62, %s1357_s6  ;;  %v116_v62 = vmul.f32 0.25, %v113_v8  ;;  %v644_v34 = vmax.f32 %v636_v26, 0.0  ;;  %v646_v35 = vmax.f32 %v638_v27, 0.0  ;;  %v648_v36 = vmax.f32 %v640_v28, 0.0 }
  0x49   :  { %133 = vrot.lane.b32.xlu0 %v1468_v7, %s1356_s1  ;;  %v384_v38 = vadd.f32 %v383_v24, %v382_v30  ;;  %v650_v39 = vmin.f32 %v642_v31, 1.0  ;;  %v633_v40 = vadd.f32 1.0, %v625_v29  ;;  %v635_v41 = vmul.f32 0.5, %v627_v32  ;;  %v892_v30 = vld [vmem:[#allocation6 + $0x68] sm:$0xff]  ;;  %v894_v31 = vld [vmem:[#allocation6 + $0x78] sm:$0xff] }
  0x4a   :  { %118 = vst.msk [vmem:[#allocation2 + $0x28] sm:$0xff] %vm99_vm5, %v116_v62  ;;  %v652_v42 = vmin.f32 %v644_v34, 1.0  ;;  %v654_v43 = vmin.f32 %v646_v35, 1.0  ;;  %v656_v45 = vmin.f32 %v648_v36, 1.0  ;;  %v637_v46 = vmul.f32 0.5, %v629_v33 }
  0x4b   :  { %v152_v47 = vmul.f32 2.0, %v1468_v7  ;;  %v658_v48 = vsel %vm99_vm5, %v650_v39, 0.0  ;;  %v639_v49 = vmul.f32 0.5, %v631_v37  ;;  %v641_v22 = vmul.f32 0.5, %v633_v40 }
  0x4c   :  { %v386_v52 = vmul.f32 0.25, %v384_v38  ;;  %v659_v53 = vsel %vm99_vm5, %v652_v42, 0.0  ;;  %v661_v54 = vsel %vm99_vm5, %v654_v43, 0.0  ;;  %v643_v55 = vmax.f32 %v635_v41, 0.0  ;;  %v1496_v32 = vld [vmem:[#allocation2 + $0x18] sm:$0xff] }
  0x4d   :  { %v660_v56 = vadd.f32 %v659_v53, %v658_v48  ;;  %v645_v57 = vmax.f32 %v637_v46, 0.0  ;;  %v647_v58 = vmax.f32 %v639_v49, 0.0  ;;  %v649_v59 = vmax.f32 %v641_v22, 0.0 }
  0x4e   :  { %v663_v63 = vsel %vm99_vm5, %v656_v45, 0.0  ;;  %v651_v1 = vmin.f32 %v643_v55, 1.0  ;;  %v895_v2 = vadd.f32 1.0, %v887_v50  ;;  %v897_v3 = vadd.f32 1.0, %v889_v51 }
  0x4f   :  { %v662_v5 = vadd.f32 %v661_v54, %v660_v56  ;;  %v653_v6 = vmin.f32 %v645_v57, 1.0  ;;  %v655_v23 = vmin.f32 %v647_v58, 1.0  ;;  %v657_v8 = vmin.f32 %v649_v59, 1.0 }
  0x50   :  { %v665_v13 = vsel %vm99_vm5, %v651_v1, 0.0  ;;  %v899_v14 = vadd.f32 1.0, %v891_v60  ;;  %v901_v15 = vadd.f32 1.0, %v893_v61  ;;  %v903_v27 = vmul.f32 0.5, %v895_v2 }
  0x51   :  { %v1485_v4 = vld [vmem:[#allocation2 + $0x28] sm:$0xff]  ;;  %v664_v21 = vadd.f32 %v663_v63, %v662_v5  ;;  %v666_v24 = vsel %vm99_vm5, %v653_v6, 0.0  ;;  %v668_v25 = vsel %vm99_vm5, %v655_v23, 0.0  ;;  %v670_v62 = vsel %vm99_vm5, %v657_v8, 0.0 }
  0x52   :  { %388 = vst.msk [vmem:[#allocation2 + $0x28] sm:$0xff] %vm99_vm5, %v386_v52  ;;  %135 = vrot.lane.b32.xlu0 %v1485_v4, %s1356_s1  ;;  %v153_v9 = vmul.f32 2.0, %v1485_v4  ;;  %v667_v26 = vadd.f32 %v666_v24, %v665_v13  ;;  %v905_v28 = vmul.f32 0.5, %v897_v3  ;;  %v907_v29 = vmul.f32 0.5, %v899_v14 }
  0x53   :  { %v672_v33 = vmul.f32 0.25, %v664_v21  ;;  %v909_v34 = vmul.f32 0.5, %v901_v15  ;;  %v896_v35 = vadd.f32 1.0, %v888_v17  ;;  %v898_v36 = vadd.f32 1.0, %v890_v18 }
  0x54   :  { %163 = vrot.lane.b32.xlu1 %v153_v9, %s1357_s6  ;;  %v669_v37 = vadd.f32 %v668_v25, %v667_v26  ;;  %v911_v38 = vmax.f32 %v903_v27, 0.0  ;;  %v913_v39 = vmax.f32 %v905_v28, 0.0  ;;  %v915_v40 = vmax.f32 %v907_v29, 0.0 }
  0x55   :  { %674 = vst.msk [vmem:[#allocation2 + $0x18] sm:$0xff] %vm99_vm5, %v672_v33  ;;  %v917_v41 = vmax.f32 %v909_v34, 0.0  ;;  %v900_v42 = vadd.f32 1.0, %v892_v30  ;;  %v902_v43 = vadd.f32 1.0, %v894_v31  ;;  %v904_v45 = vmul.f32 0.5, %v896_v35 }
  0x56   :  { %161 = vrot.lane.b32.xlu0 %v152_v47, %s1357_s6  ;;  %v671_v46 = vadd.f32 %v670_v62, %v669_v37  ;;  %v919_v48 = vmin.f32 %v911_v38, 1.0  ;;  %v921_v49 = vmin.f32 %v913_v39, 1.0  ;;  %v923_v22 = vmin.f32 %v915_v40, 1.0  ;;  %v1548_v35 = vld [vmem:[#allocation2 + $0x8] sm:$0x80] }
  0x57   :  { %v925_v47 = vmin.f32 %v917_v41, 1.0  ;;  %v906_v51 = vmul.f32 0.5, %v898_v36  ;;  %v908_v52 = vmul.f32 0.5, %v900_v42  ;;  %v910_v53 = vmul.f32 0.5, %v902_v43  ;;  %2218 = vst [vmem:[#allocation12_spill] sm:$0xff] %v1548_v35 }
  0x58   :  { %403 = vrot.lane.b32.xlu1 %v1496_v32, %s1356_s1  ;;  %v673_v54 = vmul.f32 0.25, %v671_v46  ;;  %v927_v56 = vsel %vm99_vm5, %v919_v48, 0.0  ;;  %v928_v57 = vsel %vm99_vm5, %v921_v49, 0.0  ;;  %v422_v58 = vmul.f32 2.0, %v1496_v32  ;;  %v395_v40 = vld [vmem:[#allocation2 + $0x30] sm:$0x1] }
  0x59   :  { %v1502_v50 = vld [vmem:[#allocation2 + $0x28] sm:$0xff]  ;;  %v929_v59 = vadd.f32 %v928_v57, %v927_v56  ;;  %v930_v60 = vsel %vm99_vm5, %v923_v22, 0.0  ;;  %v912_v61 = vmax.f32 %v904_v45, 0.0  ;;  %v932_v63 = vsel %vm99_vm5, %v925_v47, 0.0  ;;  %v125_v42 = vld [vmem:[#allocation2 + $0x30] sm:$0x1] }
  0x5a   :  { %688 = vrot.lane.b32.xlu0 %v1436_v44, %s1356_s1  ;;  %v423_v55 = vmul.f32 2.0, %v1502_v50  ;;  %675 = vst.msk [vmem:[#allocation2 + $0x28] sm:$0xff] %vm99_vm5, %v673_v54  ;;  %v914_v1 = vmax.f32 %v906_v51, 0.0  ;;  %v916_v2 = vmax.f32 %v908_v52, 0.0  ;;  %v918_v3 = vmax.f32 %v910_v53, 0.0 }
  0x5b   :  { %v931_v5 = vadd.f32 %v930_v60, %v929_v59  ;;  %v920_v6 = vmin.f32 %v912_v61, 1.0  ;;  %vm46_vm6 = vcmask 1048575   ;;  %vm48_vm7 = vcmask 1048568   ;;  %v951_v53 = vld [vmem:[#allocation2 + $0x30] sm:$0x1] }
  0x5c   :  { %405 = vrot.lane.b32.xlu1 %v1502_v50, %s1356_s1  ;;  %v922_v23 = vmin.f32 %v914_v1, 1.0  ;;  %v924_v8 = vmin.f32 %v916_v2, 1.0  ;;  %v926_v9 = vmin.f32 %v918_v3, 1.0  ;;  %47 = vst.msk [vmem:[#allocation2] sm:$0x80] %vm46_vm6, %v1355_v0  ;;  %v1519_v13 = vld [vmem:[#allocation2 + $0x18] sm:$0xff] }
  0x5d   :  { %50 = vst.msk [vmem:[#allocation2 + $0x20] sm:$0xff] %vm48_vm7, %v1355_v0  ;;  %49 = vst.msk [vmem:[#allocation2 + $0x10] sm:$0xff] %vm48_vm7, %v1355_v0  ;;  %v933_v14 = vadd.f32 %v932_v63, %v931_v5  ;;  %v934_v15 = vsel %vm99_vm5, %v920_v6, 0.0  ;;  %v709_v0 = vmul.f32 2.0, %v1519_v13  ;;  %v977_v36 = vmul.f32 2.0, %v1548_v35 }
  0x5e   :  { %433 = vrot.lane.b32.xlu0 %v423_v55, %s1357_s6  ;;  %v935_v17 = vsel %vm99_vm5, %v922_v23, 0.0  ;;  %v937_v18 = vsel %vm99_vm5, %v924_v8, 0.0  ;;  %v939_v25 = vsel %vm99_vm5, %v926_v9, 0.0  ;;  %v682_v55 = vld [vmem:[#allocation2 + $0x30] sm:$0x1]  ;;  %vm220_vm8 = vcmask 1045504  }
  0x5f   :  { %v941_v21 = vmul.f32 0.25, %v933_v14  ;;  %v936_v24 = vadd.f32 %v935_v17, %v934_v15  ;;  %vm195_vm9 = vcmask 1046528  }
  0x60   :  { %431 = vrot.lane.b32.xlu1 %v422_v58, %s1357_s6 }
  0x61   :  { %943 = vst.msk [vmem:[#allocation2 + $0x18] sm:$0xff] %vm99_vm5, %v941_v21  ;;  %v1530_v62 = vld [vmem:[#allocation2 + $0x28] sm:$0xff]  ;;  %v938_v26 = vadd.f32 %v937_v18, %v936_v24 }
  0x62   :  { %690 = vrot.lane.b32.xlu0 %v1519_v13, %s1356_s1  ;;  %v710_v27 = vmul.f32 2.0, %v1530_v62 }
  0x63   :  { %v940_v28 = vadd.f32 %v939_v25, %v938_v26 }
  0x64   :  { %692 = vrot.lane.b32.xlu1 %v1530_v62, %s1356_s1  ;;  %v1582_v14 = vld [vmem:[#allocation2 + $0x10] sm:$0xff] }
  0x65   :  { %v942_v29 = vmul.f32 0.25, %v940_v28 }
  0x66   :  { %718 = vrot.lane.b32.xlu0 %v709_v0, %s1357_s6 }
  0x67   :  { %944 = vst.msk [vmem:[#allocation2 + $0x28] sm:$0xff] %vm99_vm5, %v942_v29  ;;  %v119_v29 = vld [vmem:[#allocation2] sm:$0x80] }
  0x68   :  { %720 = vrot.lane.b32.xlu1 %v710_v27, %s1357_s6  ;;  %v1538_v30 = vld [vmem:[#allocation2 + $0x18] sm:$0xff] }
  0x69   :  { %v978_v34 = vmul.f32 2.0, %v1538_v30 }
  0x6a   :  { %959 = vrot.lane.b32.xlu0 %v1538_v30, %s1356_s1 }
  0x6e   :  { %v1542_v31 = vld [vmem:[#allocation2 + $0x28] sm:$0xff] }
  0x6f   :  { %961 = vrot.lane.b32.xlu1 %v1542_v31, %s1356_s1  ;;  %v979_v33 = vmul.f32 2.0, %v1542_v31 }
  0x71   :  { %989 = vrot.lane.b32.xlu0 %v979_v33, %s1357_s6 }
  0x73   :  { %987 = vrot.lane.b32.xlu1 %v978_v34, %s1357_s6 }
  0x75   :  { %957 = vrot.lane.b32.xlu0 %v1548_v35, %s1356_s1 }
  0x77   :  { %985 = vrot.lane.b32.xlu1 %v977_v36, %s1357_s6 }
  0xa2   :  { %v408_v37 = vpop.permute.xlu1 %407 }
  0xa3   :  { %v138_v38 = vpop.permute.xlu0 %137  ;;  %v420_v15 = vsub.f32 %v1408_v10, %v408_v37  ;;  %v419_v18 = vsub.f32 %v395_v40, %v408_v37 }
  0xa4   :  { %v150_v17 = vsub.f32 %v1410_v11, %v138_v38  ;;  %v149_v21 = vsub.f32 %v125_v42, %v138_v38 }
  0xa5   :  { %v1595_v27 = vrot.slane %v420_v15, 2  ;;  %v1598_v33 = vrot.slane %v419_v18, 2 }
  0xa6   :  { %v436_v39 = vpop.permute.xlu1 %435  ;;  %v227_v36 = vrot.slane %v149_v21, 2 }
  0xa7   :  { %v166_v41 = vpop.permute.xlu0 %165  ;;  %v447_v43 = vadd.f32 %v436_v39, %v395_v40  ;;  %v448_v45 = vadd.f32 %v436_v39, %v1408_v10 }
  0xa8   :  { %v177_v46 = vadd.f32 %v166_v41, %v125_v42  ;;  %v178_v48 = vadd.f32 %v166_v41, %v1410_v11  ;;  %v229_v11 = vrot.slane %v150_v17, 2 }
  0xa9   :  { %v1558_v49 = vadd.f32 %v447_v43, %v408_v37  ;;  %v1560_v22 = vadd.f32 %v448_v45, %v408_v37  ;;  %v1612_v45 = vld [vmem:[#allocation2 + $0x20] sm:$0xff] }
  0xaa   :  { %v1562_v47 = vadd.f32 %v177_v46, %v138_v38  ;;  %v1564_v51 = vadd.f32 %v178_v48, %v138_v38  ;;  %v992_v52 = vpop.permute.xlu1 %991 }
  0xab   :  { %v723_v54 = vpop.permute.xlu0 %722  ;;  %v1003_v56 = vadd.f32 %v992_v52, %v951_v53  ;;  %v1004_v57 = vadd.f32 %v992_v52, %v1412_v12 }
  0xac   :  { %v734_v58 = vadd.f32 %v723_v54, %v682_v55  ;;  %v735_v59 = vadd.f32 %v723_v54, %v1421_v16 }
  0xae   :  { %v964_v60 = vpop.permute.xlu1 %963 }
  0xaf   :  { %v695_v61 = vpop.permute.xlu0 %694  ;;  %v1568_v63 = vadd.f32 %v1003_v56, %v964_v60  ;;  %v1570_v1 = vadd.f32 %v1004_v57, %v964_v60  ;;  %v975_v0 = vsub.f32 %v951_v53, %v964_v60  ;;  %v976_v26 = vsub.f32 %v1412_v12, %v964_v60  ;;  %v1620_v53 = vld [vmem:[#allocation2] sm:$0x80] }
  0xb0   :  { %v1572_v2 = vadd.f32 %v734_v58, %v695_v61  ;;  %v1574_v3 = vadd.f32 %v735_v59, %v695_v61  ;;  %v706_v28 = vsub.f32 %v682_v55, %v695_v61  ;;  %v707_v10 = vsub.f32 %v1421_v16, %v695_v61 }
  0xb1   :  { %2219 = vst [vmem:[#allocation13_spill] sm:$0xff] %v1568_v63  ;;  %2220 = vst [vmem:[#allocation14_spill] sm:$0xff] %v1570_v1  ;;  %v255_v12 = vrot.slane %v1562_v47, 2  ;;  %v257_v16 = vrot.slane %v1564_v51, 2  ;;  %v1608_v41 = vrot.slane %v975_v0, 2  ;;  %v1610_v42 = vrot.slane %v976_v26, 2 }
  0xb2   :  { %v160_v6 = vpop.permute.xlu1 %159  ;;  %v1616_v52 = vrot.slane %v706_v28, 2  ;;  %v1618_v47 = vrot.slane %v707_v10, 2 }
  0xb3   :  { %v1576_v5 = vpop.permute.xlu0 %131  ;;  %2221 = vst [vmem:[#allocation15_spill] sm:$0xff] %v1608_v41  ;;  %2222 = vst [vmem:[#allocation16_spill] sm:$0xff] %v1610_v42  ;;  %v171_v43 = vadd.f32 %v160_v6, %v119_v29  ;;  %v172_v15 = vadd.f32 %v160_v6, %v1424_v19 }
  0xb4   :  { %v144_v55 = vsub.f32 %v1424_v19, %v1576_v5  ;;  %v143_v56 = vsub.f32 %v119_v29, %v1576_v5 }
  0xb5   :  { %v1631_v17 = vadd.f32 %v171_v43, %v1576_v5 }
  0xb6   :  { %v430_v8 = vpop.permute.xlu1 %429 }
  0xb7   :  { %v1578_v23 = vpop.permute.xlu0 %401  ;;  %v441_v18 = vadd.f32 %v430_v8, %v1620_v53  ;;  %v442_v21 = vadd.f32 %v430_v8, %v1426_v20 }
  0xba   :  { %v1601_v37 = vpop.permute.xlu1 %716 }
  0xbb   :  { %v1580_v9 = vpop.permute.xlu0 %133 }
  0xbc   :  { %v1588_v24 = vsub.f32 %v1468_v7, %v1580_v9  ;;  %v1592_v25 = vsub.f32 %v1582_v14, %v1580_v9 }
  0xbe   :  { %v188_v39 = vmul.f32 2.0, %v1588_v24  ;;  %v187_v40 = vmul.f32 2.0, %v1592_v25  ;;  %v221_v19 = vrot.slane %v1592_v25, 2 }
  0xc0   :  { %v197_v58 = vrot.slane %v188_v39, 1  ;;  %v196_v61 = vrot.slane %v187_v40, 1  ;;  %v222_v39 = vrot.slane %v1588_v24, 2 }
  0xc2   :  { %v209_v6 = vadd.f32 %v197_v58, %v144_v55  ;;  %v208_v54 = vadd.f32 %v196_v61, %v143_v56 }
  0xc4   :  { %v136_v57 = vpop.permute.xlu0 %135 }
  0xc5   :  { %v148_v59 = vsub.f32 %v1485_v4, %v136_v57  ;;  %v147_v60 = vsub.f32 %v1612_v45, %v136_v57 }
  0xc6   :  { %v164_v0 = vpop.permute.xlu1 %163 }
  0xc7   :  { %v190_v26 = vmul.f32 2.0, %v148_v59  ;;  %v225_v28 = vrot.slane %v148_v59, 2  ;;  %v189_v10 = vmul.f32 2.0, %v147_v60  ;;  %v223_v29 = vrot.slane %v147_v60, 2 }
  0xc8   :  { %v175_v48 = vadd.f32 %v164_v0, %v1612_v45  ;;  %v176_v40 = vadd.f32 %v164_v0, %v1485_v4  ;;  %v162_v51 = vpop.permute.xlu0 %161 }
  0xc9   :  { %v200_v43 = vrot.slane %v190_v26, 1  ;;  %v198_v46 = vrot.slane %v189_v10, 1  ;;  %v228_v8 = vsel %vm220_vm8, %v223_v29, %v227_v36  ;;  %v230_v38 = vsel %vm220_vm8, %v225_v28, %v229_v11 }
  0xca   :  { %v183_v34 = vadd.f32 %v175_v48, %v136_v57  ;;  %v184_v35 = vadd.f32 %v176_v40, %v136_v57  ;;  %v173_v36 = vadd.f32 %v162_v51, %v1582_v14  ;;  %v174_v11 = vadd.f32 %v162_v51, %v1468_v7 }
  0xcb   :  { %v213_v1 = vadd.f32 %v200_v43, %v148_v59  ;;  %v212_v63 = vadd.f32 %v198_v46, %v147_v60  ;;  %v199_v41 = vsel %vm195_vm9, %v196_v61, %v198_v46  ;;  %v201_v42 = vsel %vm195_vm9, %v197_v58, %v200_v43  ;;  %v1649_v60 = vpop.permute.xlu1 %403 }
  0xcc   :  { %v251_v4 = vrot.slane %v183_v34, 2  ;;  %v253_v0 = vrot.slane %v184_v35, 2  ;;  %v210_v55 = vadd.f32 %v199_v41, %v1592_v25  ;;  %v211_v26 = vadd.f32 %v201_v42, %v1588_v24  ;;  %v1651_v41 = vpop.permute.xlu0 %688 }
  0xcd   :  { %v241_v10 = vadd.f32 %v228_v8, %v212_v63  ;;  %v242_v56 = vadd.f32 %v230_v38, %v213_v1  ;;  %v238_v48 = vadd.f32 %v222_v39, %v209_v6  ;;  %v237_v46 = vadd.f32 %v221_v19, %v208_v54  ;;  %v1657_v38 = vld [vmem:[#allocation2] sm:$0x80] }
  0xce   :  { %v256_v57 = vsel %vm220_vm8, %v251_v4, %v255_v12  ;;  %v258_v59 = vsel %vm220_vm8, %v253_v0, %v257_v16  ;;  %v224_v63 = vsel %vm220_vm8, %v221_v19, %v223_v29  ;;  %v226_v1 = vsel %vm220_vm8, %v222_v39, %v225_v28 }
  0xcf   :  { %v275_v58 = vmul.f32 %v241_v10, %v241_v10  ;;  %v276_v61 = vmul.f32 %v242_v56, %v242_v56  ;;  %v269_v40 = vsub.f32 %v183_v34, %v256_v57  ;;  %v270_v25 = vsub.f32 %v184_v35, %v258_v59  ;;  %v406_v8 = vpop.permute.xlu1 %405 }
  0xd0   :  { %v181_v7 = vadd.f32 %v173_v36, %v1580_v9  ;;  %v182_v24 = vadd.f32 %v174_v11, %v1580_v9  ;;  %v239_v42 = vadd.f32 %v224_v63, %v210_v55  ;;  %v240_v54 = vadd.f32 %v226_v1, %v211_v26  ;;  %v434_v36 = vpop.permute.xlu0 %433 }
  0xd1   :  { %v281_v12 = vmul.f32 %v269_v40, %v269_v40  ;;  %v282_v16 = vmul.f32 %v270_v25, %v270_v25  ;;  %v180_v51 = vadd.f32 %v172_v15, %v1576_v5  ;;  %v1670_v9 = vsub.f32 %v1496_v32, %v1649_v60 }
  0xd2   :  { %v249_v34 = vrot.slane %v181_v7, 2  ;;  %v250_v6 = vrot.slane %v182_v24, 2  ;;  %v1673_v19 = vadd.f32 %v441_v18, %v1578_v23  ;;  %v1676_v5 = vadd.f32 %v442_v21, %v1578_v23 }
  0xd3   :  { %v1664_v29 = vadd.f32 %v281_v12, %v275_v58  ;;  %v1666_v39 = vadd.f32 %v282_v16, %v276_v61  ;;  %v728_v15 = vadd.f32 %v1601_v37, %v1657_v38  ;;  %v729_v43 = vadd.f32 %v1601_v37, %v1436_v44 }
  0xd4   :  { %v1682_v55 = vmul.f32 %v238_v48, %v238_v48  ;;  %v1684_v26 = vmul.f32 %v239_v42, %v239_v42  ;;  %v1686_v10 = vmul.f32 %v240_v54, %v240_v54  ;;  %v271_v56 = vmul.f32 %v237_v46, %v237_v46 }
  0xd5   :  { %v252_v18 = vsel %vm220_vm8, %v249_v34, %v251_v4  ;;  %v254_v21 = vsel %vm220_vm8, %v250_v6, %v253_v0  ;;  %v458_v37 = vmul.f32 2.0, %v1670_v9  ;;  %v1697_v59 = vadd.f32 %v728_v15, %v1651_v41 }
  0xd6   :  { %v1700_v46 = vsub.f32 %v1502_v50, %v406_v8  ;;  %v265_v4 = vsub.f32 %v1631_v17, %v249_v34  ;;  %v266_v58 = vsub.f32 %v180_v51, %v250_v6  ;;  %v1704_v0 = vsub.f32 %v1612_v45, %v406_v8 }
  0xd7   :  { %v445_v61 = vadd.f32 %v434_v36, %v1612_v45  ;;  %1243 = vrsqrt.f32 %v1664_v29  ;;  %v267_v40 = vsub.f32 %v181_v7, %v252_v18  ;;  %v268_v25 = vsub.f32 %v182_v24, %v254_v21  ;;  %v432_v21 = vpop.permute.xlu1 %431 }
  0xd8   :  { %v460_v63 = vmul.f32 2.0, %v1700_v46  ;;  %v493_v1 = vrot.slane %v1700_v46, 2  ;;  %v446_v12 = vadd.f32 %v434_v36, %v1502_v50  ;;  %v459_v17 = vmul.f32 2.0, %v1704_v0 }
  0xd9   :  { %v1711_v16 = vadd.f32 %v445_v61, %v406_v8  ;;  %v466_v42 = vrot.slane %v458_v37, 1  ;;  %v491_v51 = vrot.slane %v1704_v0, 2  ;;  %v1717_v34 = vsub.f32 %v1582_v14, %v1649_v60 }
  0xda   :  { %v469_v54 = vrot.slane %v460_v63, 1  ;;  %1245 = vrsqrt.f32 %v1666_v39  ;;  %v277_v7 = vmul.f32 %v265_v4, %v265_v4  ;;  %v454_v24 = vadd.f32 %v446_v12, %v406_v8 }
  0xdb   :  { %v467_v6 = vrot.slane %v459_v17, 1  ;;  %v278_v15 = vmul.f32 %v266_v58, %v266_v58  ;;  %v519_v36 = vrot.slane %v1711_v16, 2  ;;  %v457_v18 = vmul.f32 2.0, %v1717_v34 }
  0xdc   :  { %v482_v50 = vadd.f32 %v469_v54, %v1700_v46  ;;  %v1724_v37 = vadd.f32 %v729_v43, %v1651_v41  ;;  %v498_v63 = vsel %vm220_vm8, %v493_v1, %v1595_v27  ;;  %v521_v11 = vrot.slane %v454_v24, 2 }
  0xdd   :  { %v481_v61 = vadd.f32 %v467_v6, %v1704_v0  ;;  %v496_v8 = vsel %vm220_vm8, %v491_v51, %v1598_v33  ;;  %v2223_v46 = vrot.slane %v1558_v49, 2  ;;  %v465_v12 = vrot.slane %v457_v18, 1 }
  0xde   :  { %v510_v4 = vadd.f32 %v498_v63, %v482_v50  ;;  %v279_v17 = vmul.f32 %v267_v40, %v267_v40  ;;  %v2224_v43 = vrot.slane %v1560_v22, 2  ;;  %v280_v48 = vmul.f32 %v268_v25, %v268_v25  ;;  %v1745_v63 = vpop.permute.xlu0 %690 }
  0xdf   :  { %v524_v58 = vsel %vm220_vm8, %v519_v36, %v2223_v46  ;;  %v509_v57 = vadd.f32 %v496_v8, %v481_v61  ;;  %v468_v35 = vsel %vm195_vm9, %v465_v12, %v467_v6  ;;  %v470_v33 = vsel %vm195_vm9, %v466_v42, %v469_v54 }
  0xe0   :  { %v526_v28 = vsel %vm220_vm8, %v521_v11, %v2224_v43  ;;  %v537_v0 = vsub.f32 %v1711_v16, %v524_v58  ;;  %v1740_v50 = vadd.f32 %v277_v7, %v271_v56  ;;  %v2225_v49 = vsub.f32 %v1426_v20, %v1578_v23 }
  0xe1   :  { %v538_v27 = vsub.f32 %v454_v24, %v526_v28  ;;  %v543_v40 = vmul.f32 %v509_v57, %v509_v57  ;;  %v1747_v22 = vpop.eup %1243  ;;  %v544_v8 = vmul.f32 %v510_v4, %v510_v4  ;;  %v443_v28 = vadd.f32 %v432_v21, %v1582_v14  ;;  %v1751_v24 = vpop.permute.xlu1 %692 }
  0xe2   :  { %v478_v18 = vadd.f32 %v466_v42, %v2225_v49  ;;  %v549_v61 = vmul.f32 %v537_v0, %v537_v0  ;;  %v444_v25 = vadd.f32 %v432_v21, %v1496_v32  ;;  %v1754_v56 = vadd.f32 %v279_v17, %v1684_v26 }
  0xe3   :  { %v550_v16 = vmul.f32 %v538_v27, %v538_v27  ;;  %v479_v20 = vadd.f32 %v468_v35, %v1717_v34  ;;  %v480_v57 = vadd.f32 %v470_v33, %v1670_v9  ;;  %v451_v7 = vadd.f32 %v443_v28, %v1649_v60 }
  0xe4   :  { %v1756_v54 = vadd.f32 %v549_v61, %v543_v40  ;;  %v452_v6 = vadd.f32 %v444_v25, %v1649_v60  ;;  %v1766_v32 = vsub.f32 %v1519_v13, %v1745_v63  ;;  %v1768_v21 = vpop.eup %1245  ;;  %v1771_v26 = vadd.f32 %v280_v48, %v1686_v10  ;;  %v719_v25 = vpop.permute.xlu0 %718 }
  0xe5   :  { %v1760_v42 = vadd.f32 %v550_v16, %v544_v8  ;;  %v2227_v4 = vrot.slane %v1670_v9, 2  ;;  %v489_v46 = vrot.slane %v1717_v34, 2  ;;  %v1778_v58 = vsub.f32 %v1530_v62, %v1751_v24 }
  0xe6   :  { %2226 = vst [vmem:[#allocation17_spill] sm:$0xff] %v1756_v54  ;;  %v517_v43 = vrot.slane %v451_v7, 2  ;;  %v518_v0 = vrot.slane %v452_v6, 2  ;;  %v745_v27 = vmul.f32 2.0, %v1766_v32  ;;  %v2229_v33 = vsub.f32 %v1620_v53, %v1578_v23 }
  0xe7   :  { %v506_v35 = vadd.f32 %v2227_v4, %v478_v18  ;;  %v2228_v60 = vmov %v2227_v4  ;;  %v492_v10 = vsel %vm220_vm8, %v489_v46, %v491_v51  ;;  %v747_v34 = vmul.f32 2.0, %v1778_v58 }
  0xe8   :  { %v494_v17 = vsel %vm220_vm8, %v2228_v60, %v493_v1  ;;  %v477_v49 = vadd.f32 %v465_v12, %v2229_v33  ;;  %1247 = vrsqrt.f32 %v1754_v56  ;;  %v507_v18 = vadd.f32 %v492_v10, %v479_v20 }
  0xe9   :  { %v508_v48 = vadd.f32 %v494_v17, %v480_v57  ;;  %v520_v9 = vsel %vm220_vm8, %v517_v43, %v519_v36  ;;  %v522_v1 = vsel %vm220_vm8, %v518_v0, %v521_v11  ;;  %v1793_v40 = vadd.f32 %v278_v15, %v1682_v55 }
  0xea   :  { %1249 = vrsqrt.f32 %v1771_v26  ;;  %v533_v51 = vsub.f32 %v1673_v19, %v517_v43  ;;  %v534_v61 = vsub.f32 %v1676_v5, %v518_v0  ;;  %v535_v23 = vsub.f32 %v451_v7, %v520_v9  ;;  %v721_v0 = vpop.permute.xlu1 %720 }
  0xeb   :  { %v753_v53 = vrot.slane %v745_v27, 1  ;;  %v756_v12 = vrot.slane %v747_v34, 1  ;;  %v1800_v8 = vsub.f32 %v1582_v14, %v1745_v63  ;;  %v540_v16 = vmul.f32 %v506_v35, %v506_v35 }
  0xec   :  { %v542_v36 = vmul.f32 %v508_v48, %v508_v48  ;;  %v505_v28 = vadd.f32 %v489_v46, %v477_v49  ;;  %v536_v11 = vsub.f32 %v452_v6, %v522_v1  ;;  %1251 = vrsqrt.f32 %v1756_v54  ;;  %v2241_v54 = vld [vmem:[#allocation12_spill] sm:$0xff] }
  0xed   :  { %v541_v55 = vmul.f32 %v507_v18, %v507_v18  ;;  %v777_v15 = vrot.slane %v1766_v32, 2  ;;  %v780_v19 = vrot.slane %v1778_v58, 2  ;;  %1253 = vrsqrt.f32 %v1760_v42 }
  0xee   :  { %v545_v5 = vmul.f32 %v533_v51, %v533_v51  ;;  %v546_v20 = vmul.f32 %v534_v61, %v534_v61  ;;  %v744_v57 = vmul.f32 2.0, %v1800_v8  ;;  %v547_v7 = vmul.f32 %v535_v23, %v535_v23 }
  0xef   :  { %v757_v4 = vsel %vm195_vm9, %v753_v53, %v756_v12  ;;  %v730_v35 = vadd.f32 %v719_v25, %v1582_v14  ;;  %v731_v6 = vadd.f32 %v719_v25, %v1519_v13  ;;  %v539_v46 = vmul.f32 %v505_v28, %v505_v28 }
  0xf0   :  { %v548_v60 = vmul.f32 %v536_v11, %v536_v11  ;;  %v752_v17 = vrot.slane %v744_v57, 1  ;;  %v704_v43 = vsub.f32 %v1612_v45, %v1751_v24  ;;  %v2230_v27 = vsub.f32 %v1436_v44, %v1651_v41  ;;  %v962_v57 = vpop.permute.xlu1 %961 }
  0xf1   :  { %v781_v48 = vsel %vm220_vm8, %v777_v15, %v780_v19  ;;  %v1817_v33 = vadd.f32 %v730_v35, %v1745_v63  ;;  %v1820_v49 = vadd.f32 %v731_v6, %v1745_v63  ;;  %v1822_v13 = vadd.f32 %v545_v5, %v539_v46 }
  0xf2   :  { %v765_v10 = vadd.f32 %v753_v53, %v2230_v27  ;;  %v1824_v34 = vadd.f32 %v546_v20, %v540_v16  ;;  %v767_v18 = vadd.f32 %v757_v4, %v1766_v32  ;;  %v746_v9 = vmul.f32 2.0, %v704_v43  ;;  %v1827_v1 = vpop.eup %1247 }
  0xf3   :  { %v1829_v51 = vadd.f32 %v547_v7, %v541_v55  ;;  %v769_v44 = vadd.f32 %v756_v12, %v1778_v58  ;;  %v2231_v61 = vsub.f32 %v1657_v38, %v1651_v41  ;;  %v732_v63 = vadd.f32 %v721_v0, %v1612_v45  ;;  %v1844_v12 = vpop.permute.xlu0 %959 }
  0xf4   :  { %v1836_v53 = vpop.eup %1249  ;;  %v1838_v28 = vadd.f32 %v548_v60, %v542_v36  ;;  %v804_v16 = vrot.slane %v1817_v33, 2  ;;  %v754_v32 = vrot.slane %v746_v9, 1  ;;  %v778_v11 = vrot.slane %v704_v43, 2 }
  0xf5   :  { %v764_v23 = vadd.f32 %v752_v17, %v2231_v61  ;;  %v793_v25 = vadd.f32 %v777_v15, %v765_v10  ;;  %v776_v55 = vrot.slane %v1800_v8, 2  ;;  %v805_v5 = vrot.slane %v1820_v49, 2 }
  0xf6   :  { %v733_v58 = vadd.f32 %v721_v0, %v1530_v62  ;;  %v795_v41 = vadd.f32 %v781_v48, %v767_v18  ;;  %v768_v38 = vadd.f32 %v754_v32, %v704_v43  ;;  %v785_v20 = vsel %vm220_vm8, %v780_v19, %v1618_v47  ;;  %v1849_v7 = vpop.eup %1251 }
  0xf7   :  { %v740_v36 = vadd.f32 %v732_v63, %v1751_v24  ;;  %2232 = vst [vmem:[#allocation18_spill] sm:$0xff] %v1849_v7  ;;  %1255 = vrsqrt.f32 %v1829_v51  ;;  %v792_v15 = vadd.f32 %v776_v55, %v764_v23  ;;  %v797_v4 = vadd.f32 %v785_v20, %v769_v44  ;;  %v1853_v6 = vpop.eup %1253 }
  0xf8   :  { %v741_v35 = vadd.f32 %v733_v58, %v1751_v24  ;;  %v820_v62 = vsub.f32 %v1697_v59, %v804_v16  ;;  %v783_v47 = vsel %vm220_vm8, %v778_v11, %v1616_v52  ;;  %v1862_v46 = vsub.f32 %v1538_v30, %v1844_v12  ;;  %v990_v58 = vpop.permute.xlu0 %989 }
  0xf9   :  { %v806_v19 = vrot.slane %v740_v36, 2  ;;  %v821_v60 = vsub.f32 %v1724_v37, %v805_v5  ;;  %v796_v43 = vadd.f32 %v783_v47, %v768_v38  ;;  %v1866_v24 = vsub.f32 %v1542_v31, %v962_v57 }
  0xfa   :  { %v808_v0 = vrot.slane %v741_v35, 2  ;;  %1257 = vrsqrt.f32 %v1838_v28  ;;  %v1869_v27 = vmul.f32 %v793_v25, %v793_v25  ;;  %v1871_v59 = vmul.f32 %v795_v41, %v795_v41 }
  0xfb   :  { %v2233_v52 = vrot.slane %v1572_v2, 2  ;;  %v826_v48 = vmul.f32 %v792_v15, %v792_v15  ;;  %v779_v18 = vsel %vm220_vm8, %v776_v55, %v778_v11  ;;  %v831_v9 = vmul.f32 %v797_v4, %v797_v4 }
  0xfc   :  { %v2234_v37 = vrot.slane %v1574_v3, 2  ;;  %v755_v61 = vsel %vm195_vm9, %v752_v17, %v754_v32  ;;  %v1014_v25 = vmul.f32 2.0, %v1862_v46  ;;  %v832_v41 = vmul.f32 %v820_v62, %v820_v62 }
  0xfd   :  { %v811_v10 = vsel %vm220_vm8, %v806_v19, %v2233_v52  ;;  %v1882_v38 = vmul.f32 %v821_v60, %v821_v60  ;;  %v830_v2 = vmul.f32 %v796_v43, %v796_v43  ;;  %v1016_v20 = vmul.f32 2.0, %v1866_v24 }
  0xfe   :  { %v813_v44 = vsel %vm220_vm8, %v808_v0, %v2234_v37  ;;  %v824_v23 = vsub.f32 %v740_v36, %v811_v10  ;;  %v1049_v55 = vrot.slane %v1866_v24, 2  ;;  %v1887_v3 = vsub.f32 %v1612_v45, %v962_v57 }
  0xff   :  { %v825_v63 = vsub.f32 %v741_v35, %v813_v44  ;;  %v766_v17 = vadd.f32 %v755_v61, %v1800_v8  ;;  %v1025_v32 = vrot.slane %v1016_v20, 1  ;;  %v1001_v36 = vadd.f32 %v990_v58, %v1612_v45  ;;  %v2236_v20 = vld [vmem:[#allocation15_spill] sm:$0xff] }
 0x100   :  { %v836_v15 = vmul.f32 %v824_v23, %v824_v23  ;;  %v1002_v4 = vadd.f32 %v990_v58, %v1542_v31  ;;  %v1022_v47 = vrot.slane %v1014_v25, 1  ;;  %v1897_v60 = vmul.f32 2.0, %v1887_v3  ;;  %v988_v23 = vpop.permute.xlu1 %987 }
 0x101   :  { %v837_v11 = vmul.f32 %v825_v63, %v825_v63  ;;  %v1899_v43 = vpop.eup %1255  ;;  %v1038_v52 = vadd.f32 %v1025_v32, %v1866_v24  ;;  %v1009_v10 = vadd.f32 %v1001_v36, %v962_v57  ;;  %v2215_v8 = vrot.slane %v1887_v3, 2 }
 0x102   :  { %v1892_v35 = vadd.f32 %v836_v15, %v830_v2  ;;  %v1010_v37 = vadd.f32 %v1002_v4, %v962_v57  ;;  %v1903_v44 = vadd.f32 %v832_v41, %v826_v48  ;;  %v809_v31 = vsel %vm220_vm8, %v805_v5, %v808_v0  ;;  %v2239_v4 = vld [vmem:[#allocation14_spill] sm:$0xff] }
 0x103   :  { %v1894_v62 = vadd.f32 %v837_v11, %v831_v9  ;;  %v1023_v45 = vrot.slane %v1897_v60, 1  ;;  %v2235_v9 = vld [vmem:[#allocation16_spill] sm:$0xff]  ;;  %v794_v63 = vadd.f32 %v779_v18, %v766_v17  ;;  %v807_v25 = vsel %vm220_vm8, %v804_v16, %v806_v19  ;;  %v2237_v19 = vld [vmem:[#allocation13_spill] sm:$0xff]  ;;  %v958_v17 = vpop.permute.xlu0 %957 }
 0x104   :  { %v1054_v61 = vsel %vm220_vm8, %v1049_v55, %v2235_v9  ;;  %v1075_v58 = vrot.slane %v1009_v10, 2  ;;  %v1912_v57 = vpop.eup %1257  ;;  %v1077_v41 = vrot.slane %v1010_v37, 2  ;;  %v1917_v5 = vsub.f32 %v1582_v14, %v1844_v12 }
 0x105   :  { %v1066_v24 = vadd.f32 %v1054_v61, %v1038_v52  ;;  %v1037_v48 = vadd.f32 %v1023_v45, %v1887_v3  ;;  %v1026_v0 = vsel %vm195_vm9, %v1022_v47, %v1025_v32  ;;  %v823_v2 = vsub.f32 %v1820_v49, %v809_v31 }
 0x106   :  { %v1046_v18 = vrot.slane %v1862_v46, 2  ;;  %v1052_v16 = vsel %vm220_vm8, %v2215_v8, %v2236_v20  ;;  %v2238_v15 = vrot.slane %v2237_v19, 2  ;;  %v2240_v60 = vrot.slane %v2239_v4, 2  ;;  %v945_v20 = vld [vmem:[#allocation2] sm:$0x80] }
 0x107   :  { %v1065_v36 = vadd.f32 %v1052_v16, %v1037_v48  ;;  %v1100_v9 = vmul.f32 %v1066_v24, %v1066_v24  ;;  %v1036_v31 = vadd.f32 %v1026_v0, %v1862_v46  ;;  %v999_v61 = vadd.f32 %v988_v23, %v1582_v14  ;;  %v986_v16 = vpop.permute.xlu1 %985 }
 0x108   :  { %v1080_v11 = vsel %vm220_vm8, %v1075_v58, %v2238_v15  ;;  %v1082_v52 = vsel %vm220_vm8, %v1077_v41, %v2240_v60  ;;  %v1000_v7 = vadd.f32 %v988_v23, %v1538_v30  ;;  %v970_v15 = vsub.f32 %v2241_v54, %v958_v17 }
 0x109   :  { %v1093_v32 = vsub.f32 %v1009_v10, %v1080_v11  ;;  %v1094_v49 = vsub.f32 %v1010_v37, %v1082_v52  ;;  %v1099_v8 = vmul.f32 %v1065_v36, %v1065_v36  ;;  %v1013_v48 = vmul.f32 2.0, %v1917_v5 }
 0x10a   :  { %v1050_v60 = vsel %vm220_vm8, %v1046_v18, %v1049_v55  ;;  %v1007_v10 = vadd.f32 %v999_v61, %v1844_v12  ;;  %v1008_v37 = vadd.f32 %v1000_v7, %v1844_v12  ;;  %v1034_v14 = vadd.f32 %v1022_v47, %v970_v15 }
 0x10b   :  { %v1105_v19 = vmul.f32 %v1093_v32, %v1093_v32  ;;  %v1106_v4 = vmul.f32 %v1094_v49, %v1094_v49  ;;  %v1021_v24 = vrot.slane %v1013_v48, 1  ;;  %v969_v30 = vsub.f32 %v945_v20, %v958_v17 }
 0x10c   :  { %v1073_v0 = vrot.slane %v1007_v10, 2  ;;  %v1074_v11 = vrot.slane %v1008_v37, 2  ;;  %v997_v36 = vadd.f32 %v986_v16, %v945_v20  ;;  %v1946_v52 = vadd.f32 %v1882_v38, %v1869_v27 }
 0x10d   :  { %v1940_v46 = vadd.f32 %v1105_v19, %v1099_v8  ;;  %v1942_v23 = vadd.f32 %v1106_v4, %v1100_v9  ;;  %v828_v32 = vmul.f32 %v794_v63, %v794_v63  ;;  %v1064_v55 = vadd.f32 %v1050_v60, %v1036_v31 }
 0x10e   :  { %v998_v49 = vadd.f32 %v986_v16, %v2241_v54  ;;  %v822_v12 = vsub.f32 %v1817_v33, %v807_v25  ;;  %v835_v7 = vmul.f32 %v823_v2, %v823_v2  ;;  %v1078_v47 = vsel %vm220_vm8, %v1074_v11, %v1077_v41 }
 0x10f   :  { %v1062_v8 = vadd.f32 %v1046_v18, %v1034_v14  ;;  %v1045_v9 = vrot.slane %v1917_v5, 2  ;;  %v1092_v61 = vsub.f32 %v1008_v37, %v1078_v47  ;;  %v1024_v19 = vsel %vm195_vm9, %v1021_v24, %v1023_v45 }
 0x110   :  { %v1005_v20 = vadd.f32 %v997_v36, %v958_v17  ;;  %v1076_v15 = vsel %vm220_vm8, %v1073_v0, %v1075_v58  ;;  %v1006_v27 = vadd.f32 %v998_v49, %v958_v17  ;;  %v1033_v38 = vadd.f32 %v1021_v24, %v969_v30 }
 0x111   :  { %1259 = vrsqrt.f32 %v1793_v40  ;;  %v1098_v54 = vmul.f32 %v1064_v55, %v1064_v55  ;;  %v1104_v33 = vmul.f32 %v1092_v61, %v1092_v61  ;;  %v1035_v25 = vadd.f32 %v1024_v19, %v1917_v5 }
 0x112   :  { %1261 = vrsqrt.f32 %v1892_v35  ;;  %v1089_v63 = vsub.f32 %v1005_v20, %v1073_v0  ;;  %v1096_v41 = vmul.f32 %v1062_v8, %v1062_v8  ;;  %v1061_v2 = vadd.f32 %v1045_v9, %v1033_v38 }
 0x113   :  { %v1090_v18 = vsub.f32 %v1006_v27, %v1074_v11  ;;  %1263 = vrsqrt.f32 %v1894_v62  ;;  %v1091_v45 = vsub.f32 %v1007_v10, %v1076_v15  ;;  %v1958_v31 = vadd.f32 %v1104_v33, %v1098_v54 }
 0x114   :  { %v311_v58 = vmul.f32 %v1836_v53, %v1771_v26  ;;  %v834_v17 = vmul.f32 %v822_v12, %v822_v12  ;;  %v1963_v48 = vadd.f32 %v835_v7, %v1871_v59  ;;  %1265 = vrsqrt.f32 %v1940_v46 }
 0x115   :  { %v1102_v16 = vmul.f32 %v1090_v18, %v1090_v18  ;;  %v2242_v5 = vrot.slane %v1887_v3, 2  ;;  %1267 = vrsqrt.f32 %v1958_v31  ;;  %v1095_v60 = vmul.f32 %v1061_v2, %v1061_v2 }
 0x116   :  { %v1101_v10 = vmul.f32 %v1089_v63, %v1089_v63  ;;  %vm312_vm10 = vcmp.eq.f32.partialorder %v1771_v26, inf  ;;  %1269 = vrsqrt.f32 %v1824_v34  ;;  %v1103_v53 = vmul.f32 %v1091_v45, %v1091_v45 }
 0x117   :  { %v1048_v4 = vsel %vm220_vm8, %v1045_v9, %v2242_v5  ;;  %v1970_v14 = vadd.f32 %v1102_v16, %v1096_v41  ;;  %1271 = vrsqrt.f32 %v1942_v23  ;;  %v313_v59 = vsel %vm312_vm10, %v1771_v26, %v311_v58 }
 0x118   :  { %v1063_v37 = vadd.f32 %v1048_v4, %v1035_v25  ;;  %v579_v3 = vmul.f32 %v1912_v57, %v1838_v28  ;;  %vm314_vm11 = vcmp.eq.f32.partialorder %v1771_v26, 0.0  ;;  %v315_v24 = vand.u32 2147483648, %v1771_v26 }
 0x119   :  { %vm580_vm12 = vcmp.eq.f32.partialorder %v1838_v28, inf  ;;  %v583_v30 = vand.u32 2147483648, %v1838_v28  ;;  %v1982_v0 = vadd.f32 %v1101_v10, %v1095_v60  ;;  %1273 = vrsqrt.f32 %v1970_v14 }
 0x11a   :  { %v581_v11 = vsel %vm580_vm12, %v1838_v28, %v579_v3  ;;  %vm582_vm13 = vcmp.eq.f32.partialorder %v1838_v28, 0.0  ;;  %v1097_v55 = vmul.f32 %v1063_v37, %v1063_v37  ;;  %v316_v49 = vsel %vm314_vm11, %v315_v24, %v313_v59 }
 0x11b   :  { %v1260_v36 = vpop.eup %1259  ;;  %v584_v57 = vsel %vm582_vm13, %v583_v30, %v581_v11  ;;  %1275 = vrsqrt.f32 %v1946_v52  ;;  %v1990_v26 = vadd.f32 %v834_v17, %v828_v32  ;;  %vm298_vm14 = vcmp.eq.f32.partialorder %v1793_v40, inf }
 0x11c   :  { %v1988_v12 = vpop.eup %1261  ;;  %v297_v7 = vmul.f32 %v1260_v36, %v1793_v40  ;;  %v602_v47 = vsub.f32 %v316_v49, %v584_v57  ;;  %1277 = vrsqrt.f32 %v1963_v48  ;;  %v1994_v8 = vadd.f32 %v1103_v53, %v1097_v55 }
 0x11d   :  { %vm300_vm15 = vcmp.eq.f32.partialorder %v1793_v40, 0.0  ;;  %v301_v28 = vand.u32 2147483648, %v1793_v40  ;;  %v1999_v9 = vpop.eup %1263  ;;  %1279 = vrsqrt.f32 %v1982_v0  ;;  %vm566_vm0 = vcmp.eq.f32.partialorder %v1824_v34, inf }
 0x11e   :  { %vm568_vm1 = vcmp.eq.f32.partialorder %v1824_v34, 0.0  ;;  %v569_v32 = vand.u32 2147483648, %v1824_v34  ;;  %v2005_v61 = vpop.eup %1265  ;;  %v299_v19 = vsel %vm298_vm14, %v1793_v40, %v297_v7  ;;  %vm853_vm2 = vcmp.eq.f32.partialorder %v1946_v52, inf }
 0x11f   :  { %v856_v20 = vand.u32 2147483648, %v1946_v52  ;;  %v870_v15 = vand.u32 2147483648, %v1963_v48  ;;  %1281 = vrsqrt.f32 %v1740_v50  ;;  %v1268_v27 = vpop.eup %1267  ;;  %v2012_v38 = vand.u32 2147483647, %v602_v47 }
 0x120   :  { %vm855_vm3 = vcmp.eq.f32.partialorder %v1946_v52, 0.0  ;;  %vm867_vm4 = vcmp.eq.f32.partialorder %v1963_v48, inf  ;;  %vm1122_vm6 = vcmp.eq.f32.partialorder %v1970_v14, inf  ;;  %vm1124_vm7 = vcmp.eq.f32.partialorder %v1970_v14, 0.0  ;;  %v1270_v33 = vpop.eup %1269 }
 0x121   :  { %v1125_v54 = vand.u32 2147483648, %v1970_v14  ;;  %vm869_vm8 = vcmp.eq.f32.partialorder %v1963_v48, 0.0  ;;  %v1135_v63 = vmul.f32 %v1268_v27, %v1958_v31  ;;  %vm1136_vm9 = vcmp.eq.f32.partialorder %v1958_v31, inf  ;;  %v2024_v25 = vpop.eup %1271 }
 0x122   :  { %vm1138_vm10 = vcmp.eq.f32.partialorder %v1958_v31, 0.0  ;;  %1283 = vrsqrt.f32 %v1822_v13  ;;  %v302_v41 = vsel %vm300_vm15, %v301_v28, %v299_v19  ;;  %v565_v2 = vmul.f32 %v1270_v33, %v1824_v34 }
 0x123   :  { %v1139_v18 = vand.u32 2147483648, %v1958_v31  ;;  %v304_v45 = vmul.f32 %v1827_v1, %v1754_v56  ;;  %v294_v58 = vand.u32 2147483648, %v1740_v50  ;;  %vm305_vm11 = vcmp.eq.f32.partialorder %v1754_v56, inf  ;;  %v1274_v16 = vpop.eup %1273 }
 0x124   :  { %vm307_vm12 = vcmp.eq.f32.partialorder %v1754_v56, 0.0  ;;  %v572_v17 = vmul.f32 %v1899_v43, %v1829_v51  ;;  %v567_v40 = vsel %vm566_vm0, %v1824_v34, %v565_v2  ;;  %v1137_v5 = vsel %vm1136_vm9, %v1958_v31, %v1135_v63 }
 0x125   :  { %vm291_vm13 = vcmp.eq.f32.partialorder %v1740_v50, inf  ;;  %v308_v1 = vand.u32 2147483648, %v1754_v56  ;;  %vm573_vm14 = vcmp.eq.f32.partialorder %v1829_v51, inf  ;;  %v1276_v4 = vpop.eup %1275  ;;  %v570_v60 = vsel %vm568_vm1, %v569_v32, %v567_v40 }
 0x126   :  { %v1121_v10 = vmul.f32 %v1274_v16, %v1970_v14  ;;  %v574_v43 = vsel %vm573_vm14, %v1829_v51, %v572_v17  ;;  %v576_v37 = vand.u32 2147483648, %v1829_v51  ;;  %v1278_v53 = vpop.eup %1277  ;;  %v852_v59 = vmul.f32 %v1276_v4, %v1946_v52 }
 0x127   :  { %v306_v3 = vsel %vm305_vm11, %v1754_v56, %v304_v45  ;;  %vm575_vm15 = vcmp.eq.f32.partialorder %v1829_v51, 0.0  ;;  %1285 = vrsqrt.f32 %v1903_v44  ;;  %v866_v34 = vmul.f32 %v1278_v53, %v1963_v48  ;;  %v1280_v11 = vpop.eup %1279 }
 0x128   :  { %v1123_v24 = vsel %vm1122_vm6, %v1970_v14, %v1121_v10  ;;  %vm293_vm0 = vcmp.eq.f32.partialorder %v1740_v50, 0.0  ;;  %vm559_vm1 = vcmp.eq.f32.partialorder %v1822_v13, inf  ;;  %v577_v30 = vsel %vm575_vm15, %v576_v37, %v574_v43 }
 0x129   :  { %v600_v36 = vsub.f32 %v302_v41, %v570_v60  ;;  %v854_v55 = vsel %vm853_vm2, %v1946_v52, %v852_v59  ;;  %v1126_v51 = vsel %vm1124_vm7, %v1125_v54, %v1123_v24  ;;  %v1140_v49 = vsel %vm1138_vm10, %v1139_v18, %v1137_v5  ;;  %v1282_v57 = vpop.eup %1281 }
 0x12a   :  { %vm1179_vm9 = vcmask 1040384   ;;  %v857_v7 = vsel %vm855_vm3, %v856_v20, %v854_v55  ;;  %v868_v47 = vsel %vm867_vm4, %v1963_v48, %v866_v34  ;;  %v309_v28 = vsel %vm307_vm12, %v308_v1, %v306_v3 }
 0x12b   :  { %1287 = vrsqrt.f32 %v1990_v26  ;;  %v871_v14 = vsel %vm869_vm8, %v870_v15, %v868_v47  ;;  %v1156_v32 = vsub.f32 %v857_v7, %v1126_v51  ;;  %v290_v31 = vmul.f32 %v1282_v57, %v1740_v50 }
 0x12c   :  { %v601_v19 = vsub.f32 %v309_v28, %v577_v30  ;;  %v1284_v27 = vpop.eup %1283  ;;  %v1158_v54 = vsub.f32 %v871_v14, %v1140_v49  ;;  %vm561_vm2 = vcmp.eq.f32.partialorder %v1822_v13, 0.0  ;;  %v562_v52 = vand.u32 2147483648, %v1822_v13 }
 0x12d   :  { %vm846_vm3 = vcmp.eq.f32.partialorder %v1903_v44, inf  ;;  %v606_v20 = vand.u32 2147483647, %v600_v36  ;;  %v1162_v56 = vand.u32 2147483647, %v1156_v32  ;;  %v558_v33 = vmul.f32 %v1284_v27, %v1822_v13 }
 0x12e   :  { %v1114_v63 = vmul.f32 %v1280_v11, %v1982_v0  ;;  %v1164_v48 = vand.u32 2147483647, %v1158_v54  ;;  %v292_v15 = vsel %vm291_vm13, %v1740_v50, %v290_v31  ;;  %vm848_vm4 = vcmp.eq.f32.partialorder %v1903_v44, 0.0 }
 0x12f   :  { %v849_v41 = vand.u32 2147483648, %v1903_v44  ;;  %v1168_v2 = vadd.f32 %v1162_v56, %v606_v20  ;;  %v560_v18 = vsel %vm559_vm1, %v1822_v13, %v558_v33  ;;  %v2092_v45 = vand.u32 2147483647, %v601_v19 }
 0x130   :  { %vm1115_vm6 = vcmp.eq.f32.partialorder %v1982_v0, inf  ;;  %v2096_v17 = vadd.f32 %v1164_v48, %v2012_v38  ;;  %v563_v16 = vsel %vm561_vm2, %v562_v52, %v560_v18  ;;  %1289 = vrsqrt.f32 %v1994_v8 }
 0x131   :  { %v1116_v40 = vsel %vm1115_vm6, %v1982_v0, %v1114_v63  ;;  %v1286_v5 = vpop.eup %1285  ;;  %v1183_v1 = vrot.slane %v1168_v2, 7  ;;  %v295_v4 = vsel %vm293_vm0, %v294_v58, %v292_v15  ;;  %vm860_vm7 = vcmp.eq.f32.partialorder %v1990_v26, inf  ;;  %v2244_v63 = vld [vmem:[#allocation18_spill] sm:$0xff] }
 0x132   :  { %v1118_v60 = vand.u32 2147483648, %v1982_v0  ;;  %v1184_v38 = vrot.slane %v2096_v17, 7  ;;  %v845_v13 = vmul.f32 %v1286_v5, %v1903_v44  ;;  %vm1117_vm8 = vcmp.eq.f32.partialorder %v1982_v0, 0.0 }
 0x133   :  { %v325_v10 = vmul.f32 %v1768_v21, %v1666_v39  ;;  %v599_v43 = vsub.f32 %v295_v4, %v563_v16  ;;  %vm862_vm10 = vcmp.eq.f32.partialorder %v1990_v26, 0.0  ;;  %v863_v37 = vand.u32 2147483648, %v1990_v26 }
 0x134   :  { %v1119_v50 = vsel %vm1117_vm8, %v1118_v60, %v1116_v40  ;;  %v1132_v58 = vand.u32 2147483648, %v1994_v8  ;;  %v1185_v59 = vsel %vm1179_vm9, %v1183_v1, %v1184_v38  ;;  %v847_v0 = vsel %vm846_vm3, %v1903_v44, %v845_v13 }
 0x135   :  { %v1288_v53 = vpop.eup %1287  ;;  %vm1129_vm11 = vcmp.eq.f32.partialorder %v1994_v8, inf  ;;  %vm326_vm12 = vcmp.eq.f32.partialorder %v1666_v39, inf  ;;  %v593_v21 = vmul.f32 %v1853_v6, %v1760_v42  ;;  %1192 = vrot.lane.b32.xlu1 %v1185_v59, %s1358_s7  ;;  %v850_v3 = vsel %vm848_vm4, %v849_v41, %v847_v0 }
 0x136   :  { %v859_v34 = vmul.f32 %v1288_v53, %v1990_v26  ;;  %vm1131_vm13 = vcmp.eq.f32.partialorder %v1994_v8, 0.0  ;;  %v327_v24 = vsel %vm326_vm12, %v1666_v39, %v325_v10  ;;  %vm594_vm14 = vcmp.eq.f32.partialorder %v1760_v42, inf }
 0x137   :  { %v1155_v30 = vsub.f32 %v850_v3, %v1119_v50  ;;  %v329_v11 = vand.u32 2147483648, %v1666_v39  ;;  %v595_v36 = vsel %vm594_vm14, %v1760_v42, %v593_v21  ;;  %v597_v6 = vand.u32 2147483648, %v1760_v42 }
 0x138   :  { %v605_v55 = vand.u32 2147483647, %v599_v43  ;;  %vm328_vm15 = vcmp.eq.f32.partialorder %v1666_v39, 0.0  ;;  %vm596_vm0 = vcmp.eq.f32.partialorder %v1760_v42, 0.0  ;;  %v880_v44 = vmul.f32 %v1999_v9, %v1894_v62 }
 0x139   :  { %v1161_v51 = vand.u32 2147483647, %v1155_v30  ;;  %v330_v49 = vsel %vm328_vm15, %v329_v11, %v327_v24  ;;  %v598_v57 = vsel %vm596_vm0, %v597_v6, %v595_v36  ;;  %vm881_vm1 = vcmp.eq.f32.partialorder %v1894_v62, inf }
 0x13a   :  { %v861_v7 = vsel %vm860_vm7, %v1990_v26, %v859_v34  ;;  %v604_v47 = vsub.f32 %v330_v49, %v598_v57  ;;  %v882_v28 = vsel %vm881_vm1, %v1894_v62, %v880_v44  ;;  %v1149_v39 = vmul.f32 %v2024_v25, %v1942_v23  ;;  %v1290_v14 = vpop.eup %1289  ;;  %v2243_v26 = vld [vmem:[#allocation17_spill] sm:$0xff] }
 0x13b   :  { %vm883_vm2 = vcmp.eq.f32.partialorder %v1894_v62, 0.0  ;;  %v884_v42 = vand.u32 2147483648, %v1894_v62  ;;  %vm1150_vm3 = vcmp.eq.f32.partialorder %v1942_v23, inf  ;;  %v1153_v9 = vand.u32 2147483648, %v1942_v23 }
 0x13c   :  { %v1128_v32 = vmul.f32 %v1290_v14, %v1994_v8  ;;  %v1151_v31 = vsel %vm1150_vm3, %v1942_v23, %v1149_v39  ;;  %vm1152_vm4 = vcmp.eq.f32.partialorder %v1942_v23, 0.0  ;;  %v318_v19 = vmul.f32 %v1747_v22, %v1664_v29 }
 0x13d   :  { %v864_v25 = vsel %vm862_vm10, %v863_v37, %v861_v7  ;;  %v1167_v27 = vadd.f32 %v1161_v51, %v605_v55  ;;  %v885_v54 = vsel %vm883_vm2, %v884_v42, %v882_v28  ;;  %v1154_v52 = vsel %vm1152_vm4, %v1153_v9, %v1151_v31 }
 0x13e   :  { %v1130_v62 = vsel %vm1129_vm11, %v1994_v8, %v1128_v32  ;;  %v610_v20 = vand.u32 2147483647, %v604_v47  ;;  %v1160_v56 = vsub.f32 %v885_v54, %v1154_v52  ;;  %vm319_vm6 = vcmp.eq.f32.partialorder %v1664_v29, inf }
 0x13f   :  { %v1133_v23 = vsel %vm1131_vm13, %v1132_v58, %v1130_v62  ;;  %v320_v33 = vsel %vm319_vm6, %v1664_v29, %v318_v19  ;;  %v322_v22 = vand.u32 2147483648, %v1664_v29  ;;  %v586_v48 = vmul.f32 %v2244_v63, %v2243_v26 }
 0x140   :  { %v1157_v15 = vsub.f32 %v864_v25, %v1133_v23  ;;  %v1166_v41 = vand.u32 2147483647, %v1160_v56  ;;  %vm587_vm7 = vcmp.eq.f32.partialorder %v2243_v26, inf  ;;  %v590_v2 = vand.u32 2147483648, %v2243_v26 }
 0x141   :  { %vm321_vm8 = vcmp.eq.f32.partialorder %v1664_v29, 0.0  ;;  %v588_v18 = vsel %vm587_vm7, %v2243_v26, %v586_v48  ;;  %vm589_vm10 = vcmp.eq.f32.partialorder %v2243_v26, 0.0  ;;  %v873_v8 = vmul.f32 %v1988_v12, %v1892_v35 }
 0x142   :  { %v1163_v16 = vand.u32 2147483647, %v1157_v15  ;;  %v1172_v40 = vadd.f32 %v1166_v41, %v610_v20  ;;  %v323_v5 = vsel %vm321_vm8, %v322_v22, %v320_v33  ;;  %v591_v1 = vsel %vm589_vm10, %v590_v2, %v588_v18 }
 0x143   :  { %v1180_v4 = vrot.slane %v1167_v27, 7  ;;  %v603_v60 = vsub.f32 %v323_v5, %v591_v1  ;;  %vm874_vm11 = vcmp.eq.f32.partialorder %v1892_v35, inf  ;;  %v1142_v13 = vmul.f32 %v2005_v61, %v1940_v46 }
 0x144   :  { %v1169_v29 = vadd.f32 %v1163_v16, %v2092_v45  ;;  %v1188_v10 = vrot.slane %v1172_v40, 7  ;;  %v875_v43 = vsel %vm874_vm11, %v1892_v35, %v873_v8  ;;  %vm1143_vm12 = vcmp.eq.f32.partialorder %v1940_v46, inf }
 0x145   :  { %v877_v12 = vand.u32 2147483648, %v1892_v35  ;;  %v1144_v37 = vsel %vm1143_vm12, %v1940_v46, %v1142_v13  ;;  %v1146_v50 = vand.u32 2147483648, %v1940_v46  ;;  %vm876_vm13 = vcmp.eq.f32.partialorder %v1892_v35, 0.0 }
 0x146   :  { %v1181_v58 = vrot.slane %v1169_v29, 7  ;;  %v1189_v53 = vsel %vm1179_vm9, %v1184_v38, %v1188_v10  ;;  %vm1145_vm14 = vcmp.eq.f32.partialorder %v1940_v46, 0.0  ;;  %v609_v21 = vand.u32 2147483647, %v603_v60 }
 0x147   :  { %1196 = vrot.lane.b32.xlu1 %v1189_v53, %s1358_s7  ;;  %v878_v61 = vsel %vm876_vm13, %v877_v12, %v875_v43  ;;  %v1147_v45 = vsel %vm1145_vm14, %v1146_v50, %v1144_v37  ;;  %vm1198_vm15 = vcmask 7168  }
 0x148   :  { %v1182_v59 = vsel %vm1179_vm9, %v1180_v4, %v1181_v58  ;;  %v1159_v0 = vsub.f32 %v878_v61, %v1147_v45 }
 0x149   :  { %1190 = vrot.lane.b32.xlu0 %v1182_v59, %s1358_s7 }
 0x14a   :  { %v1165_v3 = vand.u32 2147483647, %v1159_v0 }
 0x14c   :  { %v1171_v34 = vadd.f32 %v1165_v3, %v609_v21 }
 0x14e   :  { %v1186_v24 = vrot.slane %v1171_v34, 7 }
 0x150   :  { %v1187_v17 = vsel %vm1179_vm9, %v1181_v58, %v1186_v24 }
 0x151   :  { %1194 = vrot.lane.b32.xlu0 %v1187_v17, %s1358_s7 }
 0x1a7   :  { %v1193_v35 = vpop.permute.xlu1 %1192 }
 0x1b9   :  { %v1197_v46 = vpop.permute.xlu1 %1196 }
 0x1bb   :  { %v1191_v38 = vpop.permute.xlu0 %1190 }
 0x1bc   :  { %v1199_v30 = vsel %vm1198_vm15, %v1191_v38, %v1193_v35 }
 0x1bd   :  { %v1203_v6 = vsel %vm99_vm5, %v1199_v30, 0.0 }
 0x1c3   :  { %v1195_v11 = vpop.permute.xlu0 %1194 }
 0x1c4   :  { %v1200_v36 = vsel %vm1198_vm15, %v1195_v11, %v1197_v46 }
 0x1c5   :  { %v1204_v55 = vsel %vm99_vm5, %v1200_v36, 0.0 }
 0x1c6   :  { %v1205_v44 = vadd.f32 %v1204_v55, %v1203_v6 }
 0x1c8   :  { %1206 = vadd.xlane.f32.xlu0 %v1205_v44 }
 0x255   :  { %v1207_v51 = vpop.xlane.xlu0 %1206 }
 0x256   :  { %v1208_v49 = vrot.slane %v1207_v51, 4 }
 0x258   :  { %v1209_v57 = vadd.f32 %v1208_v49, %v1207_v51 }
 0x25a   :  { %v1210_v7 = vrot.slane %v1209_v57, 2 }
 0x25c   :  { %v1211_v47 = vadd.f32 %v1210_v7, %v1209_v57 }
 0x25e   :  { %v1212_v28 = vrot.slane %v1211_v47, 1 }
 0x260   :  { %v1213_v39 = vadd.f32 %v1212_v28, %v1211_v47 }
 0x262   :  { %1232 = vpush %v1213_v39 }
 0x293   :  { %s1233_s8 = spop %1232 }
 0x294   :  { %1216 = sst [smem:[#allocation8]] %s1233_s8 }
 0x295   :  { %1344 = shalt.err (!%p1341_p4)
}
 0x296   :  { %s1359_s16 = smov [#allocation8]  }
 0x297   :  { %1224 = dma.smem_to_hbm %s1359_s16, 16, %s2210_s2, [#allocation5]  }
 0x298   :  { %1349 = dma.done.wait [#allocation5], 16  }
 0x299   :  { %1350 = vsyncadd [#allocation5], 4294967280 }
 0x29a   :  { %1228 = sfence }
 0x29b   :  { %1229 = vsyncpa [#allocation4], 1 }
 0x29c   :  { %1230 = vsyncpa [#allocation7], 1 }
 0x29d   :  { %1231 = vsyncpa [#allocation5], 1 }

</bundles_post_ra>
